<compile_context>
chip_gen: v7x
topology: tpu7x:2x2x1
jax: 0.10.0
libtpu: 0.0.40
codegen_flags: <defaults>
</compile_context>

<pallas_src>
import jax
import jax.numpy as jnp
from jax.experimental import pallas as pl
from jax.experimental.pallas import tpu as pltpu

E = 64        # emb_size
HALF = 32     # emb_size // 2
QIN = 16      # width of the day representation fed to self.query
T = 8         # visits per patient (sequence length)
MED_DIM = 16  # medication vocabulary size
B = 2         # number of patients

E2 = 2 * E    # concatenated [h_alpha | h_beta] width (128 lanes = 1 vreg row)
G6 = 6 * E    # interleaved gate width [r_a|r_b|z_a|z_b|n_a|n_b]

PARAM_ORDER = [
    "medemb", "wq", "bq",
    "awih", "awhh", "abih", "abhh",
    "bwih", "bwhh", "bbih", "bbhh",
    "wal", "bal", "wbe", "bbe",
    "wout", "bout",
]


def retain_kernel(day_ref, med_ref,
                  medemb_ref, wq_ref, bq_ref,
                  wih_ref, bih_ref, whh_ref, bhh_ref,
                  wbe_ref, bbe_ref, wout_ref, bout_ref,
                  out_ref):
    b, t, qin = day_ref.shape
    med_dim = med_ref.shape[-1]

    day = day_ref[...]                     # (B, T, QIN)
    med = med_ref[...]                     # (B, T, MED_DIM)

    # p_med[-1] = 0 for every patient (fused in-kernel, no wrapper copy of `med`).
    t_idx = jax.lax.broadcasted_iota(jnp.int32, med.shape, dimension=1)
    med = jnp.where(t_idx == t - 1, 0.0, med)

    day2 = day.reshape(b * t, qin)         # fold batch into the matmul M dim
    med2 = med.reshape(b * t, med_dim)

    # queries = ReLU(Linear(16 -> 32)(day_rep))
    queries = jnp.maximum(
        jnp.dot(day2, wq_ref[...], preferred_element_type=jnp.float32) + bq_ref[...],
        0.0)                               # (B*T, HALF)
    # visit_emb = concat(med @ med_embeddings, queries)
    vis_med = jnp.dot(med2, medemb_ref[...], preferred_element_type=jnp.float32)
    visit = jnp.concatenate([vis_med, queries], axis=-1)          # (B*T, E)

    # GRU input projections for BOTH GRUs and all time steps in one MXU matmul.
    # Column layout: [r_a|r_b | z_a|z_b | n_a|n_b] -> gate slices are 128-lane aligned.
    xproj = (jnp.dot(visit, wih_ref[...], preferred_element_type=jnp.float32)
             + bih_ref[...])               # (B*T, 6E)
    xproj3 = xproj.reshape(b, t, G6)

    whh = whh_ref[...]                     # (2E, 6E) block-diagonal over the two GRUs
    bhh = bhh_ref[...]                     # (1, 6E)

    # Recurrence: both GRUs in lockstep; h = [h_alpha | h_beta], shape (B, 2E).
    # Small, static sequence -> fully unrolled; only this chain stays serial.
    h = jnp.zeros((b, E2), jnp.float32)
    hs = []
    for step in range(t):
        x_t = xproj3[:, step, :]                                          # (B, 6E)
        hproj = jnp.dot(h, whh, preferred_element_type=jnp.float32) + bhh  # (B, 6E)
        # PyTorch GRU cell, gate order [r, z, n]; n uses r * (W_hn h + b_hn).
        r = jax.nn.sigmoid(x_t[:, 0:E2] + hproj[:, 0:E2])
        z = jax.nn.sigmoid(x_t[:, E2:2 * E2] + hproj[:, E2:2 * E2])
        n = jnp.tanh(x_t[:, 2 * E2:3 * E2] + r * hproj[:, 2 * E2:3 * E2])
        h = (1.0 - z) * n + z * h
        hs.append(h)

    hseq = jnp.stack(hs, axis=1).reshape(b * t, E2)                       # (B*T, 2E)

    # attn_g = softmax(alpha_li(g), dim=-1) over a size-1 axis == 1.0 exactly,
    # so the alpha branch (wal/bal, exp, divide) is dropped; output is unchanged.
    # TODO(synk): classic RETAIN softmaxes over the visit axis; the PyTorch module
    # softmaxes a size-1 axis (likely a modeling bug). Current semantics preserved.
    #
    # attn_h = tanh(beta_li(h_beta)).  wbe_ref has its alpha rows zero-padded
    # (shape (2E, E)) so the full interleaved state is used without an unaligned
    # 64-lane slice: [h_a|h_b] @ [[0],[W_be]] == h_b @ W_be exactly.
    attn_h = jnp.tanh(
        jnp.dot(hseq, wbe_ref[...], preferred_element_type=jnp.float32) + bbe_ref[...])

    ctx = (attn_h * visit).reshape(b, t, E).sum(axis=1)                   # (B, E)
    out_ref[...] = (jnp.dot(ctx, wout_ref[...], preferred_element_type=jnp.float32)
                    + bout_ref[...])                                      # (B, MED_DIM)


def _pack_gru(awih, awhh, abih, abhh, bwih, bwhh, bbih, bbhh):
    """Interleave the two GRUs' weights per gate.

    Output column layout (width 6E): [r_a|r_b | z_a|z_b | n_a|n_b].
    whh_c is block-diagonal: rows 0..E-1 consume h_alpha, rows E..2E-1 consume h_beta,
    so one (B, 2E) @ (2E, 6E) matmul advances both GRUs per time step.
    """
    def inter(a, bm):
        return jnp.concatenate(
            [a[:, 0:E], bm[:, 0:E],
             a[:, E:2 * E], bm[:, E:2 * E],
             a[:, 2 * E:3 * E], bm[:, 2 * E:3 * E]], axis=-1)

    wih_c = inter(awih, bwih)            # (E, 6E)
    bih_c = inter(abih, bbih)            # (1, 6E)
    bhh_c = inter(abhh, bbhh)            # (1, 6E)
    zero = jnp.zeros((E, E), jnp.float32)
    top = jnp.concatenate(
        [awhh[:, 0:E], zero, awhh[:, E:2 * E], zero, awhh[:, 2 * E:3 * E], zero], axis=-1)
    bot = jnp.concatenate(
        [zero, bwhh[:, 0:E], zero, bwhh[:, E:2 * E], zero, bwhh[:, 2 * E:3 * E]], axis=-1)
    whh_c = jnp.concatenate([top, bot], axis=0)   # (2E, 6E)
    return wih_c, bih_c, whh_c, bhh_c


def make_params(key):
    ks = jax.random.split(key, len(PARAM_ORDER))
    k = dict(zip(PARAM_ORDER, ks))
    scale = 0.1
    n = lambda kk, shape: scale * jax.random.normal(kk, shape, jnp.float32)
    return {
        "medemb": n(k["medemb"], (MED_DIM, HALF)),
        "wq":     n(k["wq"], (QIN, HALF)),
        "bq":     n(k["bq"], (1, HALF)),
        "awih":   n(k["awih"], (E, 3 * E)),
        "awhh":   n(k["awhh"], (E, 3 * E)),
        "abih":   n(k["abih"], (1, 3 * E)),
        "abhh":   n(k["abhh"], (1, 3 * E)),
        "bwih":   n(k["bwih"], (E, 3 * E)),
        "bwhh":   n(k["bwhh"], (E, 3 * E)),
        "bbih":   n(k["bbih"], (1, 3 * E)),
        "bbhh":   n(k["bbhh"], (1, 3 * E)),
        "wal":    n(k["wal"], (E, 1)),
        "bal":    n(k["bal"], (1, 1)),
        "wbe":    n(k["wbe"], (E, E)),
        "bbe":    n(k["bbe"], (1, E)),
        "wout":   n(k["wout"], (E, MED_DIM)),
        "bout":   n(k["bout"], (1, MED_DIM)),
    }


@jax.jit
def retain_forward(day_rep, med, params):
    b = day_rep.shape[0]
    # Gate-aligned / block-diagonal GRU weight packing (cheap, ideally hoisted out
    # of the per-call path in a real model).
    wih_c, bih_c, whh_c, bhh_c = _pack_gru(
        params["awih"], params["awhh"], params["abih"], params["abhh"],
        params["bwih"], params["bwhh"], params["bbih"], params["bbhh"])

    # beta_li weight zero-padded on its alpha rows: [h_a|h_b] @ wbe_pad == h_b @ wbe,
    # which lets the kernel skip the unaligned h[:, E:2E] lane slice.
    wbe_pad = jnp.concatenate(
        [jnp.zeros((E, E), jnp.float32), params["wbe"]], axis=0)   # (2E, E)

    # NOTE: wal / bal are intentionally not passed: softmax over a size-1 axis is 1.0.
    plist = [params["medemb"], params["wq"], params["bq"],
             wih_c, bih_c, whh_c, bhh_c,
             wbe_pad, params["bbe"], params["wout"], params["bout"]]

    n_in = 2 + len(plist)
    out = pl.pallas_call(
        retain_kernel,
        out_shape=jax.ShapeDtypeStruct((b, MED_DIM), jnp.float32),
        # Single invocation, no grid: every operand is one whole-array VMEM block
        # (total resident footprint << VMEM on v5e/v6e/v7x).
        in_specs=[pl.BlockSpec(memory_space=pltpu.MemorySpace.VMEM)
                  for _ in range(n_in)],
        out_specs=pl.BlockSpec(memory_space=pltpu.MemorySpace.VMEM),
    )(day_rep, med, *plist)
    return out, None   # matches (self.output(final_rep), None)


def retain_reference(day_rep, med, params):
    """Pure-JAX reference with the original module's semantics (incl. the
    size-1-axis softmax, both GRUs, and the wrapper-side med mask)."""
    med = med.at[:, -1, :].set(0.0)

    def per_patient(day, m):
        queries = jax.nn.relu(day @ params["wq"] + params["bq"][0])
        visit_emb = jnp.concatenate([m @ params["medemb"], queries], axis=-1)

        def gru(wih, whh, bih, bhh):
            xp = visit_emb @ wih + bih[0]

            def step(h, x):
                hp = h @ whh + bhh[0]
                xr, xz, xn = jnp.split(x, 3)
                hr, hz, hn = jnp.split(hp, 3)
                r = jax.nn.sigmoid(xr + hr)
                z = jax.nn.sigmoid(xz + hz)
                n = jnp.tanh(xn + r * hn)
                hnew = (1.0 - z) * n + z * h
                return hnew, hnew

            _, hs = jax.lax.scan(step, jnp.zeros((E,), jnp.float32), xp)
            return hs

        g = gru(params["awih"], params["awhh"], params["abih"], params["abhh"])
        h = gru(params["bwih"], params["bwhh"], params["bbih"], params["bbhh"])
        attn_g = jax.nn.softmax(g @ params["wal"] + params["bal"][0], axis=-1)
        attn_h = jnp.tanh(h @ params["wbe"] + params["bbe"][0])
        c = jnp.sum(attn_g * attn_h * visit_emb, axis=0)
        return c @ params["wout"] + params["bout"][0]

    return jax.vmap(per_patient)(day_rep, med)


if __name__ == "__main__":
    key = jax.random.PRNGKey(0)
    k_day, k_med, k_params = jax.random.split(key, 3)

    day_rep = jax.random.normal(k_day, (B, T, QIN), jnp.float32)
    med = jax.random.bernoulli(k_med, 0.3, (B, T, MED_DIM)).astype(jnp.float32)
    params = make_params(k_params)

    out, aux = retain_forward(day_rep, med, params)
    out = jax.block_until_ready(out)
    assert aux is None
    assert out.shape == (B, MED_DIM)

    ref = retain_reference(day_rep, med, params)
    assert jnp.allclose(out, ref, rtol=1e-3, atol=1e-3), (
        f"max abs err {jnp.max(jnp.abs(out - ref))}")

    print("KERNEL_OK")
</pallas_src>

<mosaic_0001>
module attributes {stable_mosaic.version = 11 : i64} {
  func.func @retain_kernel(%arg0: memref<2x8x16xf32, #tpu.memory_space<vmem>>, %arg1: memref<2x8x16xf32, #tpu.memory_space<vmem>>, %arg2: memref<16x32xf32, #tpu.memory_space<vmem>>, %arg3: memref<16x32xf32, #tpu.memory_space<vmem>>, %arg4: memref<1x32xf32, #tpu.memory_space<vmem>>, %arg5: memref<64x384xf32, #tpu.memory_space<vmem>>, %arg6: memref<1x384xf32, #tpu.memory_space<vmem>>, %arg7: memref<128x384xf32, #tpu.memory_space<vmem>>, %arg8: memref<1x384xf32, #tpu.memory_space<vmem>>, %arg9: memref<128x64xf32, #tpu.memory_space<vmem>>, %arg10: memref<1x64xf32, #tpu.memory_space<vmem>>, %arg11: memref<64x16xf32, #tpu.memory_space<vmem>>, %arg12: memref<1x16xf32, #tpu.memory_space<vmem>>, %arg13: memref<2x16xf32, #tpu.memory_space<vmem>>) attributes {dimension_semantics = [], scalar_prefetch = 0 : i64, scratch_operands = 0 : i64, tpu.core_type = #tpu.core_type<tc>} {
    %c0 = arith.constant 0 : index
    %c0_0 = arith.constant 0 : index
    %c0_1 = arith.constant 0 : index
    %0 = vector.load %arg0[%c0, %c0_0, %c0_1] : memref<2x8x16xf32, #tpu.memory_space<vmem>>, vector<2x8x16xf32>
    %c0_2 = arith.constant 0 : index
    %c0_3 = arith.constant 0 : index
    %c0_4 = arith.constant 0 : index
    %1 = vector.load %arg1[%c0_2, %c0_3, %c0_4] : memref<2x8x16xf32, #tpu.memory_space<vmem>>, vector<2x8x16xf32>
    %2 = tpu.iota {dimensions = array<i32: 1>} : vector<2x8x16xi32>
    %c7_i32 = arith.constant 7 : i32
    %3 = vector.broadcast %c7_i32 : i32 to vector<2x8x16xi32>
    %4 = arith.cmpi eq, %2, %3 : vector<2x8x16xi32>
    %cst = arith.constant 0.000000e+00 : f32
    %5 = vector.broadcast %cst : f32 to vector<2x8x16xf32>
    %6 = arith.select %4, %5, %1 : vector<2x8x16xi1>, vector<2x8x16xf32>
    %7 = vector.shape_cast %0 : vector<2x8x16xf32> to vector<16x16xf32>
    %8 = vector.shape_cast %6 : vector<2x8x16xf32> to vector<16x16xf32>
    %c0_5 = arith.constant 0 : index
    %c0_6 = arith.constant 0 : index
    %9 = vector.load %arg3[%c0_5, %c0_6] : memref<16x32xf32, #tpu.memory_space<vmem>>, vector<16x32xf32>
    %cst_7 = arith.constant dense<0.000000e+00> : vector<16x32xf32>
    %10 = tpu.matmul %7, %9, %cst_7 {dimension_numbers = #tpu.dot_dimension_numbers<[1], [0], [0], [1], [0, 0, 1, 1], [], []>} : vector<16x16xf32>, vector<16x32xf32>, vector<16x32xf32> -> vector<16x32xf32>
    %c0_8 = arith.constant 0 : index
    %c0_9 = arith.constant 0 : index
    %11 = vector.load %arg4[%c0_8, %c0_9] : memref<1x32xf32, #tpu.memory_space<vmem>>, vector<1x32xf32>
    %12 = vector.broadcast %11 : vector<1x32xf32> to vector<16x32xf32>
    %13 = arith.addf %10, %12 : vector<16x32xf32>
    %cst_10 = arith.constant 0.000000e+00 : f32
    %14 = vector.broadcast %cst_10 : f32 to vector<16x32xf32>
    %15 = arith.maximumf %13, %14 : vector<16x32xf32>
    %c0_11 = arith.constant 0 : index
    %c0_12 = arith.constant 0 : index
    %16 = vector.load %arg2[%c0_11, %c0_12] : memref<16x32xf32, #tpu.memory_space<vmem>>, vector<16x32xf32>
    %cst_13 = arith.constant dense<0.000000e+00> : vector<16x32xf32>
    %17 = tpu.matmul %8, %16, %cst_13 {dimension_numbers = #tpu.dot_dimension_numbers<[1], [0], [0], [1], [0, 0, 1, 1], [], []>} : vector<16x16xf32>, vector<16x32xf32>, vector<16x32xf32> -> vector<16x32xf32>
    %18 = tpu.concatenate %17, %15 in 1 : vector<16x32xf32>, vector<16x32xf32> -> vector<16x64xf32>
    %c0_14 = arith.constant 0 : index
    %c0_15 = arith.constant 0 : index
    %19 = vector.load %arg5[%c0_14, %c0_15] : memref<64x384xf32, #tpu.memory_space<vmem>>, vector<64x384xf32>
    %cst_16 = arith.constant dense<0.000000e+00> : vector<16x384xf32>
    %20 = tpu.matmul %18, %19, %cst_16 {dimension_numbers = #tpu.dot_dimension_numbers<[1], [0], [0], [1], [0, 0, 1, 1], [], []>} : vector<16x64xf32>, vector<64x384xf32>, vector<16x384xf32> -> vector<16x384xf32>
    %c0_17 = arith.constant 0 : index
    %c0_18 = arith.constant 0 : index
    %21 = vector.load %arg6[%c0_17, %c0_18] : memref<1x384xf32, #tpu.memory_space<vmem>>, vector<1x384xf32>
    %22 = vector.broadcast %21 : vector<1x384xf32> to vector<16x384xf32>
    %23 = arith.addf %20, %22 : vector<16x384xf32>
    %24 = vector.shape_cast %23 : vector<16x384xf32> to vector<2x8x384xf32>
    %c0_19 = arith.constant 0 : index
    %c0_20 = arith.constant 0 : index
    %25 = vector.load %arg7[%c0_19, %c0_20] : memref<128x384xf32, #tpu.memory_space<vmem>>, vector<128x384xf32>
    %c0_21 = arith.constant 0 : index
    %c0_22 = arith.constant 0 : index
    %26 = vector.load %arg8[%c0_21, %c0_22] : memref<1x384xf32, #tpu.memory_space<vmem>>, vector<1x384xf32>
    %cst_23 = arith.constant 0.000000e+00 : f32
    %27 = vector.broadcast %cst_23 : f32 to vector<2x128xf32>
    %28 = vector.extract_strided_slice %24 {offsets = [0, 0, 0], sizes = [2, 1, 384], strides = [1, 1, 1]} : vector<2x8x384xf32> to vector<2x1x384xf32>
    %29 = vector.shape_cast %28 : vector<2x1x384xf32> to vector<2x384xf32>
    %cst_24 = arith.constant dense<0.000000e+00> : vector<2x384xf32>
    %30 = tpu.matmul %27, %25, %cst_24 {dimension_numbers = #tpu.dot_dimension_numbers<[1], [0], [0], [1], [0, 0, 1, 1], [], []>} : vector<2x128xf32>, vector<128x384xf32>, vector<2x384xf32> -> vector<2x384xf32>
    %31 = vector.broadcast %26 : vector<1x384xf32> to vector<2x384xf32>
    %32 = arith.addf %30, %31 : vector<2x384xf32>
    %33 = vector.extract_strided_slice %29 {offsets = [0, 0], sizes = [2, 128], strides = [1, 1]} : vector<2x384xf32> to vector<2x128xf32>
    %34 = vector.extract_strided_slice %32 {offsets = [0, 0], sizes = [2, 128], strides = [1, 1]} : vector<2x384xf32> to vector<2x128xf32>
    %35 = arith.addf %33, %34 : vector<2x128xf32>
    %36 = arith.negf %35 : vector<2x128xf32>
    %37 = math.exp %36 : vector<2x128xf32>
    %cst_25 = arith.constant 1.000000e+00 : f32
    %38 = vector.broadcast %cst_25 : f32 to vector<2x128xf32>
    %39 = arith.addf %38, %37 : vector<2x128xf32>
    %40 = arith.divf %38, %39 : vector<2x128xf32>
    %41 = vector.extract_strided_slice %29 {offsets = [0, 128], sizes = [2, 128], strides = [1, 1]} : vector<2x384xf32> to vector<2x128xf32>
    %42 = vector.extract_strided_slice %32 {offsets = [0, 128], sizes = [2, 128], strides = [1, 1]} : vector<2x384xf32> to vector<2x128xf32>
    %43 = arith.addf %41, %42 : vector<2x128xf32>
    %44 = arith.negf %43 : vector<2x128xf32>
    %45 = math.exp %44 : vector<2x128xf32>
    %cst_26 = arith.constant 1.000000e+00 : f32
    %46 = vector.broadcast %cst_26 : f32 to vector<2x128xf32>
    %47 = arith.addf %46, %45 : vector<2x128xf32>
    %48 = arith.divf %46, %47 : vector<2x128xf32>
    %49 = vector.extract_strided_slice %29 {offsets = [0, 256], sizes = [2, 128], strides = [1, 1]} : vector<2x384xf32> to vector<2x128xf32>
    %50 = vector.extract_strided_slice %32 {offsets = [0, 256], sizes = [2, 128], strides = [1, 1]} : vector<2x384xf32> to vector<2x128xf32>
    %51 = arith.mulf %40, %50 : vector<2x128xf32>
    %52 = arith.addf %49, %51 : vector<2x128xf32>
    %53 = math.tanh %52 : vector<2x128xf32>
    %cst_27 = arith.constant 1.000000e+00 : f32
    %54 = vector.broadcast %cst_27 : f32 to vector<2x128xf32>
    %55 = arith.subf %54, %48 : vector<2x128xf32>
    %56 = arith.mulf %55, %53 : vector<2x128xf32>
    %57 = arith.mulf %48, %27 : vector<2x128xf32>
    %58 = arith.addf %56, %57 : vector<2x128xf32>
    %59 = vector.extract_strided_slice %24 {offsets = [0, 1, 0], sizes = [2, 1, 384], strides = [1, 1, 1]} : vector<2x8x384xf32> to vector<2x1x384xf32>
    %60 = vector.shape_cast %59 : vector<2x1x384xf32> to vector<2x384xf32>
    %cst_28 = arith.constant dense<0.000000e+00> : vector<2x384xf32>
    %61 = tpu.matmul %58, %25, %cst_28 {dimension_numbers = #tpu.dot_dimension_numbers<[1], [0], [0], [1], [0, 0, 1, 1], [], []>} : vector<2x128xf32>, vector<128x384xf32>, vector<2x384xf32> -> vector<2x384xf32>
    %62 = vector.broadcast %26 : vector<1x384xf32> to vector<2x384xf32>
    %63 = arith.addf %61, %62 : vector<2x384xf32>
    %64 = vector.extract_strided_slice %60 {offsets = [0, 0], sizes = [2, 128], strides = [1, 1]} : vector<2x384xf32> to vector<2x128xf32>
    %65 = vector.extract_strided_slice %63 {offsets = [0, 0], sizes = [2, 128], strides = [1, 1]} : vector<2x384xf32> to vector<2x128xf32>
    %66 = arith.addf %64, %65 : vector<2x128xf32>
    %67 = arith.negf %66 : vector<2x128xf32>
    %68 = math.exp %67 : vector<2x128xf32>
    %cst_29 = arith.constant 1.000000e+00 : f32
    %69 = vector.broadcast %cst_29 : f32 to vector<2x128xf32>
    %70 = arith.addf %69, %68 : vector<2x128xf32>
    %71 = arith.divf %69, %70 : vector<2x128xf32>
    %72 = vector.extract_strided_slice %60 {offsets = [0, 128], sizes = [2, 128], strides = [1, 1]} : vector<2x384xf32> to vector<2x128xf32>
    %73 = vector.extract_strided_slice %63 {offsets = [0, 128], sizes = [2, 128], strides = [1, 1]} : vector<2x384xf32> to vector<2x128xf32>
    %74 = arith.addf %72, %73 : vector<2x128xf32>
    %75 = arith.negf %74 : vector<2x128xf32>
    %76 = math.exp %75 : vector<2x128xf32>
    %cst_30 = arith.constant 1.000000e+00 : f32
    %77 = vector.broadcast %cst_30 : f32 to vector<2x128xf32>
    %78 = arith.addf %77, %76 : vector<2x128xf32>
    %79 = arith.divf %77, %78 : vector<2x128xf32>
    %80 = vector.extract_strided_slice %60 {offsets = [0, 256], sizes = [2, 128], strides = [1, 1]} : vector<2x384xf32> to vector<2x128xf32>
    %81 = vector.extract_strided_slice %63 {offsets = [0, 256], sizes = [2, 128], strides = [1, 1]} : vector<2x384xf32> to vector<2x128xf32>
    %82 = arith.mulf %71, %81 : vector<2x128xf32>
    %83 = arith.addf %80, %82 : vector<2x128xf32>
    %84 = math.tanh %83 : vector<2x128xf32>
    %cst_31 = arith.constant 1.000000e+00 : f32
    %85 = vector.broadcast %cst_31 : f32 to vector<2x128xf32>
    %86 = arith.subf %85, %79 : vector<2x128xf32>
    %87 = arith.mulf %86, %84 : vector<2x128xf32>
    %88 = arith.mulf %79, %58 : vector<2x128xf32>
    %89 = arith.addf %87, %88 : vector<2x128xf32>
    %90 = vector.extract_strided_slice %24 {offsets = [0, 2, 0], sizes = [2, 1, 384], strides = [1, 1, 1]} : vector<2x8x384xf32> to vector<2x1x384xf32>
    %91 = vector.shape_cast %90 : vector<2x1x384xf32> to vector<2x384xf32>
    %cst_32 = arith.constant dense<0.000000e+00> : vector<2x384xf32>
    %92 = tpu.matmul %89, %25, %cst_32 {dimension_numbers = #tpu.dot_dimension_numbers<[1], [0], [0], [1], [0, 0, 1, 1], [], []>} : vector<2x128xf32>, vector<128x384xf32>, vector<2x384xf32> -> vector<2x384xf32>
    %93 = vector.broadcast %26 : vector<1x384xf32> to vector<2x384xf32>
    %94 = arith.addf %92, %93 : vector<2x384xf32>
    %95 = vector.extract_strided_slice %91 {offsets = [0, 0], sizes = [2, 128], strides = [1, 1]} : vector<2x384xf32> to vector<2x128xf32>
    %96 = vector.extract_strided_slice %94 {offsets = [0, 0], sizes = [2, 128], strides = [1, 1]} : vector<2x384xf32> to vector<2x128xf32>
    %97 = arith.addf %95, %96 : vector<2x128xf32>
    %98 = arith.negf %97 : vector<2x128xf32>
    %99 = math.exp %98 : vector<2x128xf32>
    %cst_33 = arith.constant 1.000000e+00 : f32
    %100 = vector.broadcast %cst_33 : f32 to vector<2x128xf32>
    %101 = arith.addf %100, %99 : vector<2x128xf32>
    %102 = arith.divf %100, %101 : vector<2x128xf32>
    %103 = vector.extract_strided_slice %91 {offsets = [0, 128], sizes = [2, 128], strides = [1, 1]} : vector<2x384xf32> to vector<2x128xf32>
    %104 = vector.extract_strided_slice %94 {offsets = [0, 128], sizes = [2, 128], strides = [1, 1]} : vector<2x384xf32> to vector<2x128xf32>
    %105 = arith.addf %103, %104 : vector<2x128xf32>
    %106 = arith.negf %105 : vector<2x128xf32>
    %107 = math.exp %106 : vector<2x128xf32>
    %cst_34 = arith.constant 1.000000e+00 : f32
    %108 = vector.broadcast %cst_34 : f32 to vector<2x128xf32>
    %109 = arith.addf %108, %107 : vector<2x128xf32>
    %110 = arith.divf %108, %109 : vector<2x128xf32>
    %111 = vector.extract_strided_slice %91 {offsets = [0, 256], sizes = [2, 128], strides = [1, 1]} : vector<2x384xf32> to vector<2x128xf32>
    %112 = vector.extract_strided_slice %94 {offsets = [0, 256], sizes = [2, 128], strides = [1, 1]} : vector<2x384xf32> to vector<2x128xf32>
    %113 = arith.mulf %102, %112 : vector<2x128xf32>
    %114 = arith.addf %111, %113 : vector<2x128xf32>
    %115 = math.tanh %114 : vector<2x128xf32>
    %cst_35 = arith.constant 1.000000e+00 : f32
    %116 = vector.broadcast %cst_35 : f32 to vector<2x128xf32>
    %117 = arith.subf %116, %110 : vector<2x128xf32>
    %118 = arith.mulf %117, %115 : vector<2x128xf32>
    %119 = arith.mulf %110, %89 : vector<2x128xf32>
    %120 = arith.addf %118, %119 : vector<2x128xf32>
    %121 = vector.extract_strided_slice %24 {offsets = [0, 3, 0], sizes = [2, 1, 384], strides = [1, 1, 1]} : vector<2x8x384xf32> to vector<2x1x384xf32>
    %122 = vector.shape_cast %121 : vector<2x1x384xf32> to vector<2x384xf32>
    %cst_36 = arith.constant dense<0.000000e+00> : vector<2x384xf32>
    %123 = tpu.matmul %120, %25, %cst_36 {dimension_numbers = #tpu.dot_dimension_numbers<[1], [0], [0], [1], [0, 0, 1, 1], [], []>} : vector<2x128xf32>, vector<128x384xf32>, vector<2x384xf32> -> vector<2x384xf32>
    %124 = vector.broadcast %26 : vector<1x384xf32> to vector<2x384xf32>
    %125 = arith.addf %123, %124 : vector<2x384xf32>
    %126 = vector.extract_strided_slice %122 {offsets = [0, 0], sizes = [2, 128], strides = [1, 1]} : vector<2x384xf32> to vector<2x128xf32>
    %127 = vector.extract_strided_slice %125 {offsets = [0, 0], sizes = [2, 128], strides = [1, 1]} : vector<2x384xf32> to vector<2x128xf32>
    %128 = arith.addf %126, %127 : vector<2x128xf32>
    %129 = arith.negf %128 : vector<2x128xf32>
    %130 = math.exp %129 : vector<2x128xf32>
    %cst_37 = arith.constant 1.000000e+00 : f32
    %131 = vector.broadcast %cst_37 : f32 to vector<2x128xf32>
    %132 = arith.addf %131, %130 : vector<2x128xf32>
    %133 = arith.divf %131, %132 : vector<2x128xf32>
    %134 = vector.extract_strided_slice %122 {offsets = [0, 128], sizes = [2, 128], strides = [1, 1]} : vector<2x384xf32> to vector<2x128xf32>
    %135 = vector.extract_strided_slice %125 {offsets = [0, 128], sizes = [2, 128], strides = [1, 1]} : vector<2x384xf32> to vector<2x128xf32>
    %136 = arith.addf %134, %135 : vector<2x128xf32>
    %137 = arith.negf %136 : vector<2x128xf32>
    %138 = math.exp %137 : vector<2x128xf32>
    %cst_38 = arith.constant 1.000000e+00 : f32
    %139 = vector.broadcast %cst_38 : f32 to vector<2x128xf32>
    %140 = arith.addf %139, %138 : vector<2x128xf32>
    %141 = arith.divf %139, %140 : vector<2x128xf32>
    %142 = vector.extract_strided_slice %122 {offsets = [0, 256], sizes = [2, 128], strides = [1, 1]} : vector<2x384xf32> to vector<2x128xf32>
    %143 = vector.extract_strided_slice %125 {offsets = [0, 256], sizes = [2, 128], strides = [1, 1]} : vector<2x384xf32> to vector<2x128xf32>
    %144 = arith.mulf %133, %143 : vector<2x128xf32>
    %145 = arith.addf %142, %144 : vector<2x128xf32>
    %146 = math.tanh %145 : vector<2x128xf32>
    %cst_39 = arith.constant 1.000000e+00 : f32
    %147 = vector.broadcast %cst_39 : f32 to vector<2x128xf32>
    %148 = arith.subf %147, %141 : vector<2x128xf32>
    %149 = arith.mulf %148, %146 : vector<2x128xf32>
    %150 = arith.mulf %141, %120 : vector<2x128xf32>
    %151 = arith.addf %149, %150 : vector<2x128xf32>
    %152 = vector.extract_strided_slice %24 {offsets = [0, 4, 0], sizes = [2, 1, 384], strides = [1, 1, 1]} : vector<2x8x384xf32> to vector<2x1x384xf32>
    %153 = vector.shape_cast %152 : vector<2x1x384xf32> to vector<2x384xf32>
    %cst_40 = arith.constant dense<0.000000e+00> : vector<2x384xf32>
    %154 = tpu.matmul %151, %25, %cst_40 {dimension_numbers = #tpu.dot_dimension_numbers<[1], [0], [0], [1], [0, 0, 1, 1], [], []>} : vector<2x128xf32>, vector<128x384xf32>, vector<2x384xf32> -> vector<2x384xf32>
    %155 = vector.broadcast %26 : vector<1x384xf32> to vector<2x384xf32>
    %156 = arith.addf %154, %155 : vector<2x384xf32>
    %157 = vector.extract_strided_slice %153 {offsets = [0, 0], sizes = [2, 128], strides = [1, 1]} : vector<2x384xf32> to vector<2x128xf32>
    %158 = vector.extract_strided_slice %156 {offsets = [0, 0], sizes = [2, 128], strides = [1, 1]} : vector<2x384xf32> to vector<2x128xf32>
    %159 = arith.addf %157, %158 : vector<2x128xf32>
    %160 = arith.negf %159 : vector<2x128xf32>
    %161 = math.exp %160 : vector<2x128xf32>
    %cst_41 = arith.constant 1.000000e+00 : f32
    %162 = vector.broadcast %cst_41 : f32 to vector<2x128xf32>
    %163 = arith.addf %162, %161 : vector<2x128xf32>
    %164 = arith.divf %162, %163 : vector<2x128xf32>
    %165 = vector.extract_strided_slice %153 {offsets = [0, 128], sizes = [2, 128], strides = [1, 1]} : vector<2x384xf32> to vector<2x128xf32>
    %166 = vector.extract_strided_slice %156 {offsets = [0, 128], sizes = [2, 128], strides = [1, 1]} : vector<2x384xf32> to vector<2x128xf32>
    %167 = arith.addf %165, %166 : vector<2x128xf32>
    %168 = arith.negf %167 : vector<2x128xf32>
    %169 = math.exp %168 : vector<2x128xf32>
    %cst_42 = arith.constant 1.000000e+00 : f32
    %170 = vector.broadcast %cst_42 : f32 to vector<2x128xf32>
    %171 = arith.addf %170, %169 : vector<2x128xf32>
    %172 = arith.divf %170, %171 : vector<2x128xf32>
    %173 = vector.extract_strided_slice %153 {offsets = [0, 256], sizes = [2, 128], strides = [1, 1]} : vector<2x384xf32> to vector<2x128xf32>
    %174 = vector.extract_strided_slice %156 {offsets = [0, 256], sizes = [2, 128], strides = [1, 1]} : vector<2x384xf32> to vector<2x128xf32>
    %175 = arith.mulf %164, %174 : vector<2x128xf32>
    %176 = arith.addf %173, %175 : vector<2x128xf32>
    %177 = math.tanh %176 : vector<2x128xf32>
    %cst_43 = arith.constant 1.000000e+00 : f32
    %178 = vector.broadcast %cst_43 : f32 to vector<2x128xf32>
    %179 = arith.subf %178, %172 : vector<2x128xf32>
    %180 = arith.mulf %179, %177 : vector<2x128xf32>
    %181 = arith.mulf %172, %151 : vector<2x128xf32>
    %182 = arith.addf %180, %181 : vector<2x128xf32>
    %183 = vector.extract_strided_slice %24 {offsets = [0, 5, 0], sizes = [2, 1, 384], strides = [1, 1, 1]} : vector<2x8x384xf32> to vector<2x1x384xf32>
    %184 = vector.shape_cast %183 : vector<2x1x384xf32> to vector<2x384xf32>
    %cst_44 = arith.constant dense<0.000000e+00> : vector<2x384xf32>
    %185 = tpu.matmul %182, %25, %cst_44 {dimension_numbers = #tpu.dot_dimension_numbers<[1], [0], [0], [1], [0, 0, 1, 1], [], []>} : vector<2x128xf32>, vector<128x384xf32>, vector<2x384xf32> -> vector<2x384xf32>
    %186 = vector.broadcast %26 : vector<1x384xf32> to vector<2x384xf32>
    %187 = arith.addf %185, %186 : vector<2x384xf32>
    %188 = vector.extract_strided_slice %184 {offsets = [0, 0], sizes = [2, 128], strides = [1, 1]} : vector<2x384xf32> to vector<2x128xf32>
    %189 = vector.extract_strided_slice %187 {offsets = [0, 0], sizes = [2, 128], strides = [1, 1]} : vector<2x384xf32> to vector<2x128xf32>
    %190 = arith.addf %188, %189 : vector<2x128xf32>
    %191 = arith.negf %190 : vector<2x128xf32>
    %192 = math.exp %191 : vector<2x128xf32>
    %cst_45 = arith.constant 1.000000e+00 : f32
    %193 = vector.broadcast %cst_45 : f32 to vector<2x128xf32>
    %194 = arith.addf %193, %192 : vector<2x128xf32>
    %195 = arith.divf %193, %194 : vector<2x128xf32>
    %196 = vector.extract_strided_slice %184 {offsets = [0, 128], sizes = [2, 128], strides = [1, 1]} : vector<2x384xf32> to vector<2x128xf32>
    %197 = vector.extract_strided_slice %187 {offsets = [0, 128], sizes = [2, 128], strides = [1, 1]} : vector<2x384xf32> to vector<2x128xf32>
    %198 = arith.addf %196, %197 : vector<2x128xf32>
    %199 = arith.negf %198 : vector<2x128xf32>
    %200 = math.exp %199 : vector<2x128xf32>
    %cst_46 = arith.constant 1.000000e+00 : f32
    %201 = vector.broadcast %cst_46 : f32 to vector<2x128xf32>
    %202 = arith.addf %201, %200 : vector<2x128xf32>
    %203 = arith.divf %201, %202 : vector<2x128xf32>
    %204 = vector.extract_strided_slice %184 {offsets = [0, 256], sizes = [2, 128], strides = [1, 1]} : vector<2x384xf32> to vector<2x128xf32>
    %205 = vector.extract_strided_slice %187 {offsets = [0, 256], sizes = [2, 128], strides = [1, 1]} : vector<2x384xf32> to vector<2x128xf32>
    %206 = arith.mulf %195, %205 : vector<2x128xf32>
    %207 = arith.addf %204, %206 : vector<2x128xf32>
    %208 = math.tanh %207 : vector<2x128xf32>
    %cst_47 = arith.constant 1.000000e+00 : f32
    %209 = vector.broadcast %cst_47 : f32 to vector<2x128xf32>
    %210 = arith.subf %209, %203 : vector<2x128xf32>
    %211 = arith.mulf %210, %208 : vector<2x128xf32>
    %212 = arith.mulf %203, %182 : vector<2x128xf32>
    %213 = arith.addf %211, %212 : vector<2x128xf32>
    %214 = vector.extract_strided_slice %24 {offsets = [0, 6, 0], sizes = [2, 1, 384], strides = [1, 1, 1]} : vector<2x8x384xf32> to vector<2x1x384xf32>
    %215 = vector.shape_cast %214 : vector<2x1x384xf32> to vector<2x384xf32>
    %cst_48 = arith.constant dense<0.000000e+00> : vector<2x384xf32>
    %216 = tpu.matmul %213, %25, %cst_48 {dimension_numbers = #tpu.dot_dimension_numbers<[1], [0], [0], [1], [0, 0, 1, 1], [], []>} : vector<2x128xf32>, vector<128x384xf32>, vector<2x384xf32> -> vector<2x384xf32>
    %217 = vector.broadcast %26 : vector<1x384xf32> to vector<2x384xf32>
    %218 = arith.addf %216, %217 : vector<2x384xf32>
    %219 = vector.extract_strided_slice %215 {offsets = [0, 0], sizes = [2, 128], strides = [1, 1]} : vector<2x384xf32> to vector<2x128xf32>
    %220 = vector.extract_strided_slice %218 {offsets = [0, 0], sizes = [2, 128], strides = [1, 1]} : vector<2x384xf32> to vector<2x128xf32>
    %221 = arith.addf %219, %220 : vector<2x128xf32>
    %222 = arith.negf %221 : vector<2x128xf32>
    %223 = math.exp %222 : vector<2x128xf32>
    %cst_49 = arith.constant 1.000000e+00 : f32
    %224 = vector.broadcast %cst_49 : f32 to vector<2x128xf32>
    %225 = arith.addf %224, %223 : vector<2x128xf32>
    %226 = arith.divf %224, %225 : vector<2x128xf32>
    %227 = vector.extract_strided_slice %215 {offsets = [0, 128], sizes = [2, 128], strides = [1, 1]} : vector<2x384xf32> to vector<2x128xf32>
    %228 = vector.extract_strided_slice %218 {offsets = [0, 128], sizes = [2, 128], strides = [1, 1]} : vector<2x384xf32> to vector<2x128xf32>
    %229 = arith.addf %227, %228 : vector<2x128xf32>
    %230 = arith.negf %229 : vector<2x128xf32>
    %231 = math.exp %230 : vector<2x128xf32>
    %cst_50 = arith.constant 1.000000e+00 : f32
    %232 = vector.broadcast %cst_50 : f32 to vector<2x128xf32>
    %233 = arith.addf %232, %231 : vector<2x128xf32>
    %234 = arith.divf %232, %233 : vector<2x128xf32>
    %235 = vector.extract_strided_slice %215 {offsets = [0, 256], sizes = [2, 128], strides = [1, 1]} : vector<2x384xf32> to vector<2x128xf32>
    %236 = vector.extract_strided_slice %218 {offsets = [0, 256], sizes = [2, 128], strides = [1, 1]} : vector<2x384xf32> to vector<2x128xf32>
    %237 = arith.mulf %226, %236 : vector<2x128xf32>
    %238 = arith.addf %235, %237 : vector<2x128xf32>
    %239 = math.tanh %238 : vector<2x128xf32>
    %cst_51 = arith.constant 1.000000e+00 : f32
    %240 = vector.broadcast %cst_51 : f32 to vector<2x128xf32>
    %241 = arith.subf %240, %234 : vector<2x128xf32>
    %242 = arith.mulf %241, %239 : vector<2x128xf32>
    %243 = arith.mulf %234, %213 : vector<2x128xf32>
    %244 = arith.addf %242, %243 : vector<2x128xf32>
    %245 = vector.extract_strided_slice %24 {offsets = [0, 7, 0], sizes = [2, 1, 384], strides = [1, 1, 1]} : vector<2x8x384xf32> to vector<2x1x384xf32>
    %246 = vector.shape_cast %245 : vector<2x1x384xf32> to vector<2x384xf32>
    %cst_52 = arith.constant dense<0.000000e+00> : vector<2x384xf32>
    %247 = tpu.matmul %244, %25, %cst_52 {dimension_numbers = #tpu.dot_dimension_numbers<[1], [0], [0], [1], [0, 0, 1, 1], [], []>} : vector<2x128xf32>, vector<128x384xf32>, vector<2x384xf32> -> vector<2x384xf32>
    %248 = vector.broadcast %26 : vector<1x384xf32> to vector<2x384xf32>
    %249 = arith.addf %247, %248 : vector<2x384xf32>
    %250 = vector.extract_strided_slice %246 {offsets = [0, 0], sizes = [2, 128], strides = [1, 1]} : vector<2x384xf32> to vector<2x128xf32>
    %251 = vector.extract_strided_slice %249 {offsets = [0, 0], sizes = [2, 128], strides = [1, 1]} : vector<2x384xf32> to vector<2x128xf32>
    %252 = arith.addf %250, %251 : vector<2x128xf32>
    %253 = arith.negf %252 : vector<2x128xf32>
    %254 = math.exp %253 : vector<2x128xf32>
    %cst_53 = arith.constant 1.000000e+00 : f32
    %255 = vector.broadcast %cst_53 : f32 to vector<2x128xf32>
    %256 = arith.addf %255, %254 : vector<2x128xf32>
    %257 = arith.divf %255, %256 : vector<2x128xf32>
    %258 = vector.extract_strided_slice %246 {offsets = [0, 128], sizes = [2, 128], strides = [1, 1]} : vector<2x384xf32> to vector<2x128xf32>
    %259 = vector.extract_strided_slice %249 {offsets = [0, 128], sizes = [2, 128], strides = [1, 1]} : vector<2x384xf32> to vector<2x128xf32>
    %260 = arith.addf %258, %259 : vector<2x128xf32>
    %261 = arith.negf %260 : vector<2x128xf32>
    %262 = math.exp %261 : vector<2x128xf32>
    %cst_54 = arith.constant 1.000000e+00 : f32
    %263 = vector.broadcast %cst_54 : f32 to vector<2x128xf32>
    %264 = arith.addf %263, %262 : vector<2x128xf32>
    %265 = arith.divf %263, %264 : vector<2x128xf32>
    %266 = vector.extract_strided_slice %246 {offsets = [0, 256], sizes = [2, 128], strides = [1, 1]} : vector<2x384xf32> to vector<2x128xf32>
    %267 = vector.extract_strided_slice %249 {offsets = [0, 256], sizes = [2, 128], strides = [1, 1]} : vector<2x384xf32> to vector<2x128xf32>
    %268 = arith.mulf %257, %267 : vector<2x128xf32>
    %269 = arith.addf %266, %268 : vector<2x128xf32>
    %270 = math.tanh %269 : vector<2x128xf32>
    %cst_55 = arith.constant 1.000000e+00 : f32
    %271 = vector.broadcast %cst_55 : f32 to vector<2x128xf32>
    %272 = arith.subf %271, %265 : vector<2x128xf32>
    %273 = arith.mulf %272, %270 : vector<2x128xf32>
    %274 = arith.mulf %265, %244 : vector<2x128xf32>
    %275 = arith.addf %273, %274 : vector<2x128xf32>
    %276 = vector.shape_cast %58 : vector<2x128xf32> to vector<2x1x128xf32>
    %277 = vector.shape_cast %89 : vector<2x128xf32> to vector<2x1x128xf32>
    %278 = vector.shape_cast %120 : vector<2x128xf32> to vector<2x1x128xf32>
    %279 = vector.shape_cast %151 : vector<2x128xf32> to vector<2x1x128xf32>
    %280 = vector.shape_cast %182 : vector<2x128xf32> to vector<2x1x128xf32>
    %281 = vector.shape_cast %213 : vector<2x128xf32> to vector<2x1x128xf32>
    %282 = vector.shape_cast %244 : vector<2x128xf32> to vector<2x1x128xf32>
    %283 = vector.shape_cast %275 : vector<2x128xf32> to vector<2x1x128xf32>
    %284 = tpu.concatenate %276, %277, %278, %279, %280, %281, %282, %283 in 1 : vector<2x1x128xf32>, vector<2x1x128xf32>, vector<2x1x128xf32>, vector<2x1x128xf32>, vector<2x1x128xf32>, vector<2x1x128xf32>, vector<2x1x128xf32>, vector<2x1x128xf32> -> vector<2x8x128xf32>
    %285 = vector.shape_cast %284 : vector<2x8x128xf32> to vector<16x128xf32>
    %c0_56 = arith.constant 0 : index
    %c0_57 = arith.constant 0 : index
    %286 = vector.load %arg9[%c0_56, %c0_57] : memref<128x64xf32, #tpu.memory_space<vmem>>, vector<128x64xf32>
    %cst_58 = arith.constant dense<0.000000e+00> : vector<16x64xf32>
    %287 = tpu.matmul %285, %286, %cst_58 {dimension_numbers = #tpu.dot_dimension_numbers<[1], [0], [0], [1], [0, 0, 1, 1], [], []>} : vector<16x128xf32>, vector<128x64xf32>, vector<16x64xf32> -> vector<16x64xf32>
    %c0_59 = arith.constant 0 : index
    %c0_60 = arith.constant 0 : index
    %288 = vector.load %arg10[%c0_59, %c0_60] : memref<1x64xf32, #tpu.memory_space<vmem>>, vector<1x64xf32>
    %289 = vector.broadcast %288 : vector<1x64xf32> to vector<16x64xf32>
    %290 = arith.addf %287, %289 : vector<16x64xf32>
    %291 = math.tanh %290 : vector<16x64xf32>
    %292 = arith.mulf %291, %18 : vector<16x64xf32>
    %293 = vector.shape_cast %292 : vector<16x64xf32> to vector<2x8x64xf32>
    %cst_61 = arith.constant dense<0.000000e+00> : vector<2x64xf32>
    %294 = vector.multi_reduction <add>, %293, %cst_61 [1] : vector<2x8x64xf32> to vector<2x64xf32>
    %c0_62 = arith.constant 0 : index
    %c0_63 = arith.constant 0 : index
    %295 = vector.load %arg11[%c0_62, %c0_63] : memref<64x16xf32, #tpu.memory_space<vmem>>, vector<64x16xf32>
    %cst_64 = arith.constant dense<0.000000e+00> : vector<2x16xf32>
    %296 = tpu.matmul %294, %295, %cst_64 {dimension_numbers = #tpu.dot_dimension_numbers<[1], [0], [0], [1], [0, 0, 1, 1], [], []>} : vector<2x64xf32>, vector<64x16xf32>, vector<2x16xf32> -> vector<2x16xf32>
    %c0_65 = arith.constant 0 : index
    %c0_66 = arith.constant 0 : index
    %297 = vector.load %arg12[%c0_65, %c0_66] : memref<1x16xf32, #tpu.memory_space<vmem>>, vector<1x16xf32>
    %298 = vector.broadcast %297 : vector<1x16xf32> to vector<2x16xf32>
    %299 = arith.addf %296, %298 : vector<2x16xf32>
    %c0_67 = arith.constant 0 : index
    %c0_68 = arith.constant 0 : index
    %300 = vector.load %arg13[%c0_67, %c0_68] : memref<2x16xf32, #tpu.memory_space<vmem>>, vector<2x16xf32>
    tpu.vector_store %arg13[%c0_67, %c0_68], %299 {strides = array<i32>} : memref<2x16xf32, #tpu.memory_space<vmem>>, vector<2x16xf32>,
    return
  }
}

</mosaic_0001>

<bundles_post_ra>
// kernel: retain_forward.1
= control target key start
LH: loop header
LB: loop body
LE: loop exit
PB: predicated region body
PF: predicated region fallthrough
CT: control target
= control target key end

     0   :  { %vm63_vm0 = vcmask 130048   ;;  %v49_v3 = vlaneseq  ;;  %s4694_s0 = inlined_call_operand.vmem [shape: f32[2,8,16], index: 0, kind: input, shape index: {}]   ;;  %s4695_s1 = inlined_call_operand.vmem [shape: f32[2,8,16], index: 1, kind: input, shape index: {}]   ;;  %s4696_s2 = inlined_call_operand.vmem [shape: f32[16,32], index: 2, kind: input, shape index: {}]   ;;  %s4697_s3 = inlined_call_operand.vmem [shape: f32[16,32], index: 3, kind: input, shape index: {}]   ;;  %s4698_s4 = inlined_call_operand.vmem [shape: f32[1,32], index: 4, kind: input, shape index: {}]   ;;  %s4699_s5 = inlined_call_operand.vmem [shape: f32[64,384], index: 5, kind: input, shape index: {}]   ;;  %s4700_s6 = inlined_call_operand.vmem [shape: f32[1,384], index: 6, kind: input, shape index: {}]   ;;  %s4701_s7 = inlined_call_operand.vmem [shape: f32[128,384], index: 7, kind: input, shape index: {}]   ;;  %s4702_s8 = inlined_call_operand.vmem [shape: f32[1,384], index: 8, kind: input, shape index: {}]   ;;  %s4703_s9 = inlined_call_operand.vmem [shape: f32[128,64], index: 9, kind: input, shape index: {}]   ;;  %s4704_s10 = inlined_call_operand.vmem [shape: f32[1,64], index: 10, kind: input, shape index: {}]   ;;  %s4705_s11 = inlined_call_operand.vmem [shape: f32[64,16], index: 11, kind: input, shape index: {}]   ;;  %s4706_s12 = inlined_call_operand.vmem [shape: f32[1,16], index: 12, kind: input, shape index: {}]   ;;  %s4707_s13 = inlined_call_operand.hbm [shape: f32[2,16], index: 13, kind: output, shape index: {}]  }
   0x1   :  { %v54_v0 = vld [vmem:[%s4697_s3] sm:$0xff]  ;;  %v55_v1 = vld [vmem:[%s4697_s3 + $0x8] sm:$0xff] }
   0x2   :  { %v45_v2 = vld [vmem:[%s4694_s0] sm:$0xff]  ;;  %v2987_v4 = vpack.c.bf16 %v55_v1, %v54_v0  ;;  %v148_v6 = vld [vmem:[%s4696_s2 + $0x8] sm:$0xff]  ;;  %v3806_v9 = vshrl.u32 %v49_v3, 7 }
   0x3   :  { %2624 = vmatprep.mubr.msk.f32.mxu1 %vm63_vm0, %v45_v2  ;;  %v147_v5 = vld [vmem:[%s4696_s2] sm:$0xff] }
   0x4   :  { %v2991_v7 = vpack.c.bf16 %v148_v6, %v147_v5  ;;  %v47_v8 = vld [vmem:[%s4695_s1] sm:$0xff] }
   0x5   :  { %18 = vsyncpa [#allocation3], 0  ;;  %2988 = vmatprep.subr.bf16.mxu1 %v2987_v4  ;;  %v46_v10 = vld [vmem:[%s4694_s0 + $0x8] sm:$0xff]  ;;  %vm51_vm1 = vcmp.eq.s32.totalorder %v3806_v9, 7  ;;  %v245_v15 = vld [vmem:[%s4699_s5 + $0x20] sm:$0xff]  ;;  %v3712_v53 = vmov 0.0  }
   0x6   :  { %2990 = vmatpush3.bf16.msra.mxu1 %v2987_v4  ;;  %v48_v11 = vld [vmem:[%s4695_s1 + $0x8] sm:$0xff]  ;;  %v52_v12 = vsel %vm51_vm1, 0.0, %v47_v8  ;;  %v241_v16 = vld [vmem:[%s4699_s5] sm:$0xff]  ;;  %v244_v18 = vld [vmem:[%s4699_s5 + $0x18] sm:$0xff]  ;;  %353 = vmatprep.mubr.f32.mxu0 %v3712_v53  ;;  %v3714_v63 = vmov 0.0|0.0   ;;  %vm238_vm2 = vcmask 261120  }
   0x7   :  { %2992 = vmatprep.subr.bf16.mxu1 %v2991_v7  ;;  %v53_v13 = vsel %vm51_vm1, 0.0, %v48_v11  ;;  %v242_v14 = vld [vmem:[%s4699_s5 + $0x8] sm:$0xff]  ;;  %v248_v19 = vld [vmem:[%s4699_s5 + $0x38] sm:$0xff]  ;;  %v251_v20 = vld [vmem:[%s4699_s5 + $0x50] sm:$0xff]  ;;  %v2997_v21 = vpack.c.bf16 %v244_v18, %v241_v16  ;;  %vm282_vm3 = vcmask 523264   ;;  %vm3715_vm4 = vmmov 0  }
   0x8   :  { %v2995_v17 = vpack.c.bf16 %v245_v15, %v242_v14  ;;  %v2999_v22 = vpack.c.bf16 %v251_v20, %v248_v19  ;;  %v247_v23 = vld [vmem:[%s4699_s5 + $0x30] sm:$0xff]  ;;  %v250_v24 = vld [vmem:[%s4699_s5 + $0x48] sm:$0xff]  ;;  %v257_v28 = vld [vmem:[%s4699_s5 + $0x80] sm:$0xff]  ;;  %vm704_vm5 = vcmask 1041409   ;;  %vm2152_vm6 = vcmask 1040384   ;;  %s3716_s15 = smov [#allocation2]  }
   0x9   :  { %2625 = vmatmul.mubr.msk.f32.vlgmr.msra.gmra.mrb[0].mxu1 %vm63_vm0, %v46_v10  ;;  %v243_v25 = vld [vmem:[%s4699_s5 + $0x10] sm:$0xff]  ;;  %v246_v26 = vld [vmem:[%s4699_s5 + $0x28] sm:$0xff]  ;;  %v3001_v29 = vpack.c.bf16 %v250_v24, %v247_v23  ;;  %v249_v31 = vld [vmem:[%s4699_s5 + $0x40] sm:$0xff]  ;;  %vm2155_vm7 = vcmask 1041408   ;;  %vm2158_vm8 = vcmask 1042432   ;;  %vm2161_vm9 = vcmask 1043456  }
   0xa   :  { %2994 = vmatpush3.bf16.msra.mxu1 %v2991_v7  ;;  %2631 = vmatprep.mubr.msk.f32.mxu1 %vm63_vm0, %v52_v12  ;;  %v254_v27 = vld [vmem:[%s4699_s5 + $0x68] sm:$0xff]  ;;  %v3011_v30 = vpack.c.bf16 %v246_v26, %v243_v25  ;;  %v253_v33 = vld [vmem:[%s4699_s5 + $0x60] sm:$0xff]  ;;  %v256_v34 = vld [vmem:[%s4699_s5 + $0x78] sm:$0xff]  ;;  %vm2164_vm10 = vcmask 1044480   ;;  %vm2167_vm11 = vcmask 1045504   ;;  %vm2170_vm12 = vcmask 1046528  }
   0xb   :  { %2996 = vmatprep.subr.bf16.mxu0 %v2995_v17  ;;  %v3003_v32 = vpack.c.bf16 %v257_v28, %v254_v27  ;;  %v252_v35 = vld [vmem:[%s4699_s5 + $0x58] sm:$0xff]  ;;  %v263_v38 = vld [vmem:[%s4699_s5 + $0xb0] sm:$0xff]  ;;  %v258_v40 = vld [vmem:[%s4699_s5 + $0x88] sm:$0xff]  ;;  %v3005_v41 = vpack.c.bf16 %v256_v34, %v253_v33  ;;  %s2387_s16 = sshll.u32 %s3716_s15, 4  ;;  %vm2379_vm13 = vcmask 123904   ;;  %s2388_s16 = int_to_ptr.vmem [resolvable:$true] %s2387_s16 }
   0xc   :  { %2998 = vmatpush1.bf16.msra.mxu0 %v2997_v21  ;;  %3012 = vmatprep.subr.bf16.mxu1 %v3011_v30  ;;  %v3015_v36 = vpack.c.bf16 %v252_v35, %v249_v31  ;;  %v260_v37 = vld [vmem:[%s4699_s5 + $0x98] sm:$0xff]  ;;  %v255_v39 = vld [vmem:[%s4699_s5 + $0x70] sm:$0xff]  ;;  %v262_v45 = vld [vmem:[%s4699_s5 + $0xa8] sm:$0xff]  ;;  %s3688_s17 = scalar_lea.vmem %s2388_s16, 32  ;;  %p3693_p1 = scmp.lt.s32.totalorder %s2388_s16, %s2388_s16 }
   0xd   :  { %2632 = vmatmul.mubr.msk.f32.vlgmr.msra.gmra.mrb[2].mxu1 %vm63_vm0, %v53_v13  ;;  %3000 = vmatprep.subr.bf16.mxu0 %v2999_v22  ;;  %v3019_v42 = vpack.c.bf16 %v258_v40, %v255_v39  ;;  %v3007_v43 = vpack.c.bf16 %v263_v38, %v260_v37  ;;  %v259_v44 = vld [vmem:[%s4699_s5 + $0x90] sm:$0xff]  ;;  %v442_v47 = vld [vmem:[%s4701_s7 + $0x8] sm:$0xff]  ;;  %v445_v48 = vld [vmem:[%s4701_s7 + $0x20] sm:$0xff]  ;;  %p3689_p0 = scmp.ne.s32.totalorder %s2388_s16, %s3688_s17  ;;  %p3694_p2 = scmp.lt.s32.totalorder %s3688_s17, %s3688_s17 }
   0xe   :  { %3014 = vmatpush3.bf16.msra.mxu1 %v3011_v30  ;;  %v3009_v46 = vpack.c.bf16 %v262_v45, %v259_v44  ;;  %v3890_v49 = vpack.c.bf16 %v445_v48, %v442_v47  ;;  %v261_v50 = vld [vmem:[%s4699_s5 + $0xa0] sm:$0xff]  ;;  %v264_v51 = vld [vmem:[%s4699_s5 + $0xb8] sm:$0xff]  ;;  %s3713_s5 = smov 32   ;;  %v451_v3 = vld [vmem:[%s4701_s7 + $0x50] sm:$0xff] }
   0xf   :  { %3016 = vmatprep.subr.bf16.mxu1 %v3015_v36  ;;  %v3023_v52 = vpack.c.bf16 %v264_v51, %v261_v50  ;;  %v2395_v54 = vld [vmem:[%s4698_s4] ss:$0 sm:$0xff]  ;;  %v444_v1 = vld [vmem:[%s4701_s7 + $0x18] sm:$0xff]  ;;  %v447_v5 = vld [vmem:[%s4701_s7 + $0x30] sm:$0xff]  ;;  %p3695_p3 = por %p3694_p2, %p3693_p1 }
  0x10   :  { %3002 = vmatpush1.bf16.msra.mxu0 %v3001_v29  ;;  %v441_v0 = vld [vmem:[%s4701_s7] sm:$0xff]  ;;  %v448_v2 = vld [vmem:[%s4701_s7 + $0x38] sm:$0xff]  ;;  %v450_v8 = vld [vmem:[%s4701_s7 + $0x48] sm:$0xff] }
  0x11   :  { %3004 = vmatprep.subr.bf16.mxu0 %v3003_v32  ;;  %v3916_v4 = vpack.c.bf16 %v444_v1, %v441_v0  ;;  %v3921_v7 = vpack.c.bf16 %v451_v3, %v448_v2  ;;  %v443_v10 = vld [vmem:[%s4701_s7 + $0x10] sm:$0xff]  ;;  %v446_v11 = vld [vmem:[%s4701_s7 + $0x28] sm:$0xff]  ;;  %v457_v14 = vld [vmem:[%s4701_s7 + $0x80] sm:$0xff]  ;;  %v3947_v15 = vpack.c.bf16 %v450_v8, %v447_v5  ;;  %p3696_p4 = pnand %p3695_p3, %p3689_p0 }
  0x12   :  { %3018 = vmatpush3.bf16.msra.mxu1 %v3015_v36  ;;  %v454_v13 = vld [vmem:[%s4701_s7 + $0x68] sm:$0xff]  ;;  %v453_v16 = vld [vmem:[%s4701_s7 + $0x60] sm:$0xff]  ;;  %v3952_v17 = vpack.c.bf16 %v446_v11, %v443_v10  ;;  %v456_v20 = vld [vmem:[%s4701_s7 + $0x78] sm:$0xff] }
  0x13   :  { %3020 = vmatprep.subr.bf16.mxu1 %v3019_v42  ;;  %v3955_v19 = vpack.c.bf16 %v457_v14, %v454_v13  ;;  %v449_v21 = vld [vmem:[%s4701_s7 + $0x40] sm:$0xff]  ;;  %v452_v22 = vld [vmem:[%s4701_s7 + $0x58] sm:$0xff]  ;;  %v463_v25 = vld [vmem:[%s4701_s7 + $0xb0] sm:$0xff]  ;;  %v3980_v26 = vpack.c.bf16 %v456_v20, %v453_v16 }
  0x14   :  { %3006 = vmatpush1.bf16.msra.mxu0 %v3005_v41  ;;  %v460_v24 = vld [vmem:[%s4701_s7 + $0x98] sm:$0xff]  ;;  %v459_v27 = vld [vmem:[%s4701_s7 + $0x90] sm:$0xff]  ;;  %v3986_v28 = vpack.c.bf16 %v452_v22, %v449_v21  ;;  %v462_v30 = vld [vmem:[%s4701_s7 + $0xa8] sm:$0xff] }
  0x15   :  { %3008 = vmatprep.subr.bf16.mxu0 %v3007_v43  ;;  %v3989_v29 = vpack.c.bf16 %v463_v25, %v460_v24  ;;  %v455_v31 = vld [vmem:[%s4701_s7 + $0x70] sm:$0xff]  ;;  %v458_v32 = vld [vmem:[%s4701_s7 + $0x88] sm:$0xff]  ;;  %v469_v34 = vld [vmem:[%s4701_s7 + $0xe0] sm:$0xff]  ;;  %v4011_v35 = vpack.c.bf16 %v462_v30, %v459_v27  ;;  %v269_v30 = vsub.s32 0, %v3806_v9 }
  0x16   :  { %3022 = vmatpush3.bf16.msra.mxu1 %v3019_v42  ;;  %v466_v33 = vld [vmem:[%s4701_s7 + $0xc8] sm:$0xff]  ;;  %v465_v36 = vld [vmem:[%s4701_s7 + $0xc0] sm:$0xff]  ;;  %v4017_v37 = vpack.c.bf16 %v458_v32, %v455_v31  ;;  %v468_v39 = vld [vmem:[%s4701_s7 + $0xd8] sm:$0xff] }
  0x17   :  { %3024 = vmatprep.subr.bf16.mxu1 %v3023_v52  ;;  %v4020_v38 = vpack.c.bf16 %v469_v34, %v466_v33  ;;  %v461_v40 = vld [vmem:[%s4701_s7 + $0xa0] sm:$0xff]  ;;  %v464_v41 = vld [vmem:[%s4701_s7 + $0xb8] sm:$0xff]  ;;  %v475_v43 = vld [vmem:[%s4701_s7 + $0x110] sm:$0xff]  ;;  %v4039_v44 = vpack.c.bf16 %v468_v39, %v465_v36  ;;  %v273_v33 = vsub.s32 1, %v3806_v9 }
  0x18   :  { %3010 = vmatpush1.bf16.msra.mxu0 %v3009_v46  ;;  %v472_v42 = vld [vmem:[%s4701_s7 + $0xf8] sm:$0xff]  ;;  %v471_v45 = vld [vmem:[%s4701_s7 + $0xf0] sm:$0xff]  ;;  %v4045_v46 = vpack.c.bf16 %v464_v41, %v461_v40  ;;  %v474_v48 = vld [vmem:[%s4701_s7 + $0x108] sm:$0xff] }
  0x19   :  { %3028 = vmatprep.subr.bf16.mxu0 %v3890_v49  ;;  %v4048_v47 = vpack.c.bf16 %v475_v43, %v472_v42  ;;  %v467_v50 = vld [vmem:[%s4701_s7 + $0xd0] sm:$0xff]  ;;  %v470_v51 = vld [vmem:[%s4701_s7 + $0xe8] sm:$0xff]  ;;  %v485_v14 = vld [vmem:[%s4701_s7 + $0x160] sm:$0xff] }
  0x1a   :  { %3026 = vmatpush3.bf16.msra.mxu1 %v3023_v52  ;;  %v478_v52 = vld [vmem:[%s4701_s7 + $0x128] sm:$0xff]  ;;  %v487_v0 = vld [vmem:[%s4701_s7 + $0x170] sm:$0xff]  ;;  %v488_v16 = vld [vmem:[%s4701_s7 + $0x178] sm:$0xff] }
  0x1b   :  { %3059 = vmatprep.subr.bf16.mxu1 %v3714_v63  ;;  %v483_v2 = vld [vmem:[%s4701_s7 + $0x150] sm:$0xff]  ;;  %v482_v10 = vld [vmem:[%s4701_s7 + $0x148] sm:$0xff]  ;;  %v265_v31 = vld [vmem:[%s4700_s6] sm:$0x7] }
  0x1c   :  { %v479_v8 = vld [vmem:[%s4701_s7 + $0x130] sm:$0xff]  ;;  %v489_v32 = vld [vmem:[%s4702_s8] sm:$0x7]  ;;  %v270_v34 = vrot.slane %v265_v31, %v269_v30  ;;  %v274_v40 = vrot.slane %v265_v31, %v273_v33 }
  0x1d   :  { %v4120_v13 = vpack.c.bf16 %v482_v10, %v479_v8  ;;  %v4183_v36 = vrot.slane %v489_v32, %v269_v30  ;;  %v4185_v39 = vrot.slane %v489_v32, %v273_v33 }
  0xdc   :  { %v2626_v55 = vpop.f32.mrb[0].mxu1 }
  0xdd   :  { %v136_v56 = vpop.f32.mrb[1].mxu1  ;;  %v142_v58 = vadd.f32 %v2626_v55, %v2395_v54  ;;  %v4067_v55 = vpack.c.bf16 %v474_v48, %v471_v45 }
  0xde   :  { %v137_v57 = vadd.f32 %v2395_v54, %v136_v56  ;;  %v481_v54 = vld [vmem:[%s4701_s7 + $0x140] sm:$0xff] }
  0xdf   :  { %v146_v62 = vmax.f32 %v142_v58, 0.0  ;;  %v477_v56 = vld [vmem:[%s4701_s7 + $0x120] sm:$0xff]  ;;  %v4076_v58 = vpack.c.bf16 %v481_v54, %v478_v52 }
  0xe0   :  { %v145_v59 = vmax.f32 %v137_v57, 0.0  ;;  %v2633_v60 = vpop.f32.mrb[2].mxu1  ;;  %v4073_v57 = vpack.c.bf16 %v470_v51, %v467_v50 }
  0xe1   :  { %v221_v61 = vpop.f32.mrb[3].mxu1 }
  0xe2   :  { %232 = vrot.lane.b32.xlu0 %v145_v59, %s3713_s5  ;;  %v480_v59 = vld [vmem:[%s4701_s7 + $0x138] sm:$0xff] }
  0xe3   :  { %v4095_v1 = vpack.c.bf16 %v480_v59, %v477_v56 }
  0xe6   :  { %234 = vrot.lane.b32.xlu0 %v146_v62, %s3713_s5  ;;  %v484_v62 = vld [vmem:[%s4701_s7 + $0x158] sm:$0xff] }
  0xe7   :  { %v4104_v5 = vpack.c.bf16 %v487_v0, %v484_v62 }
 0x154   :  { %v233_v6 = vpop.permute.xlu0 %232 }
 0x155   :  { %v3933_v12 = vsel %vm238_vm2, %v221_v61, %v233_v6  ;;  %v476_v61 = vld [vmem:[%s4701_s7 + $0x118] sm:$0xff]  ;;  %v486_v6 = vld [vmem:[%s4701_s7 + $0x168] sm:$0xff] }
 0x156   :  { %2400 = vmatmul.mubr.msk.f32.vlgmr.msra.gmra.mrb[0].mxu0 %vm282_vm3, %v3933_v12  ;;  %2650 = vmatprep.mubr.msk.f32.mxu1 %vm282_vm3, %v3933_v12  ;;  %v4117_v11 = vpack.c.bf16 %v486_v6, %v483_v2 }
 0x157   :  { %3030 = vmatpush1.bf16.msra.mxu0 %v3916_v4  ;;  %359 = vmatprep.mubr.f32.mxu0 %v3712_v53 }
 0x158   :  { %v235_v18 = vpop.permute.xlu0 %234  ;;  %3032 = vmatprep.subr.bf16.mxu0 %v3921_v7 }
 0x159   :  { %v3967_v23 = vsel %vm238_vm2, %v2633_v60, %v235_v18  ;;  %v473_v60 = vld [vmem:[%s4701_s7 + $0x100] sm:$0xff]  ;;  %v4132_v18 = vpack.c.bf16 %v488_v16, %v485_v14 }
 0x15a   :  { %2401 = vmatmul.mubr.msk.f32.gmra.mrb[2].mxu0 %vm282_vm3, %v3967_v23  ;;  %2651 = vmatmul.mubr.msk.f32.vlgmr.msra.gmra.mrb[4].mxu1 %vm282_vm3, %v3967_v23  ;;  %v4101_v3 = vpack.c.bf16 %v476_v61, %v473_v60 }
 0x15b   :  { %3034 = vmatpush1.bf16.msra.mxu0 %v3947_v15  ;;  %3061 = vmatpush3.bf16.msra.mxu1 %v3952_v17 }
 0x15c   :  { %3036 = vmatprep.subr.bf16.mxu0 %v3955_v19  ;;  %570 = vmatprep.mubr.f32.mxu0 %v3712_v53 }
 0x15d   :  { %3062 = vmatprep.subr.bf16.mxu1 %v3714_v63  ;;  %2685 = vmatprep.mubr.msk.f32.mxu1 %vm3715_vm4, %v3712_v53 }
 0x15f   :  { %3038 = vmatpush1.bf16.msra.mxu0 %v3980_v26  ;;  %3064 = vmatpush3.bf16.msra.mxu1 %v3986_v28 }
 0x160   :  { %3040 = vmatprep.subr.bf16.mxu0 %v3989_v29  ;;  %3065 = vmatprep.subr.bf16.mxu1 %v3714_v63 }
 0x163   :  { %3042 = vmatpush1.bf16.msra.mxu0 %v4011_v35  ;;  %3067 = vmatpush3.bf16.msra.mxu1 %v4017_v37 }
 0x164   :  { %3044 = vmatprep.subr.bf16.mxu0 %v4020_v38  ;;  %3068 = vmatprep.subr.bf16.mxu1 %v3714_v63 }
 0x167   :  { %3046 = vmatpush1.bf16.msra.mxu0 %v4039_v44  ;;  %3070 = vmatpush3.bf16.msra.mxu1 %v4045_v46 }
 0x168   :  { %3048 = vmatprep.subr.bf16.mxu0 %v4048_v47  ;;  %3071 = vmatprep.subr.bf16.mxu1 %v3714_v63 }
 0x16b   :  { %3050 = vmatpush1.bf16.msra.mxu0 %v4067_v55  ;;  %3073 = vmatpush3.bf16.msra.mxu1 %v4073_v57 }
 0x16c   :  { %3052 = vmatprep.subr.bf16.mxu0 %v4076_v58  ;;  %3074 = vmatprep.subr.bf16.mxu1 %v3714_v63 }
 0x16f   :  { %3054 = vmatpush1.bf16.msra.mxu0 %v4095_v1  ;;  %3076 = vmatpush3.bf16.msra.mxu1 %v4101_v3 }
 0x170   :  { %3056 = vmatprep.subr.bf16.mxu0 %v4104_v5  ;;  %3077 = vmatprep.subr.bf16.mxu1 %v3714_v63 }
 0x173   :  { %3058 = vmatpush1.bf16.msra.mxu0 %v4117_v11  ;;  %3079 = vmatpush3.bf16.msra.mxu1 %v4120_v13 }
 0x174   :  { %3080 = vmatprep.subr.bf16.mxu1 %v3714_v63  ;;  %3084 = vmatprep.subr.bf16.mxu0 %v3890_v49 }
 0x176   :  { %571 = vmatmul.mubr.f32.vlgmr.msra.gmra.mrb[4].mxu0 %v3712_v53 }
 0x177   :  { %3082 = vmatpush3.bf16.msra.mxu1 %v4132_v18  ;;  %3086 = vmatpush1.bf16.msra.mxu0 %v3916_v4 }
 0x178   :  { %3115 = vmatprep.subr.bf16.mxu1 %v3714_v63  ;;  %3088 = vmatprep.subr.bf16.mxu0 %v3921_v7 }
 0x179   :  { %771 = vmatprep.mubr.f32.mxu0 %v3712_v53 }
 0x17a   :  { %2686 = vmatmul.mubr.f32.vlgmr.msra.gmra.mrb[6].mxu1 %v3712_v53 }
 0x17b   :  { %3117 = vmatpush3.bf16.msra.mxu1 %v3952_v17  ;;  %3090 = vmatpush1.bf16.msra.mxu0 %v3947_v15 }
 0x17c   :  { %3118 = vmatprep.subr.bf16.mxu1 %v3714_v63  ;;  %3092 = vmatprep.subr.bf16.mxu0 %v3955_v19 }
 0x17d   :  { %2720 = vmatprep.mubr.msk.f32.mxu1 %vm3715_vm4, %v3712_v53 }
 0x17f   :  { %3120 = vmatpush3.bf16.msra.mxu1 %v3986_v28  ;;  %3094 = vmatpush1.bf16.msra.mxu0 %v3980_v26 }
 0x180   :  { %3121 = vmatprep.subr.bf16.mxu1 %v3714_v63  ;;  %3096 = vmatprep.subr.bf16.mxu0 %v3989_v29 }
 0x183   :  { %3123 = vmatpush3.bf16.msra.mxu1 %v4017_v37  ;;  %3098 = vmatpush1.bf16.msra.mxu0 %v4011_v35 }
 0x184   :  { %3124 = vmatprep.subr.bf16.mxu1 %v3714_v63  ;;  %3100 = vmatprep.subr.bf16.mxu0 %v4020_v38 }
 0x187   :  { %3126 = vmatpush3.bf16.msra.mxu1 %v4045_v46  ;;  %3102 = vmatpush1.bf16.msra.mxu0 %v4039_v44 }
 0x188   :  { %3127 = vmatprep.subr.bf16.mxu1 %v3714_v63  ;;  %3104 = vmatprep.subr.bf16.mxu0 %v4048_v47 }
 0x18b   :  { %3129 = vmatpush3.bf16.msra.mxu1 %v4073_v57  ;;  %3106 = vmatpush1.bf16.msra.mxu0 %v4067_v55 }
 0x18c   :  { %3130 = vmatprep.subr.bf16.mxu1 %v3714_v63  ;;  %3108 = vmatprep.subr.bf16.mxu0 %v4076_v58 }
 0x18f   :  { %3132 = vmatpush3.bf16.msra.mxu1 %v4101_v3  ;;  %3110 = vmatpush1.bf16.msra.mxu0 %v4095_v1 }
 0x190   :  { %3133 = vmatprep.subr.bf16.mxu1 %v3714_v63  ;;  %3112 = vmatprep.subr.bf16.mxu0 %v4104_v5 }
 0x193   :  { %3135 = vmatpush3.bf16.msra.mxu1 %v4120_v13  ;;  %3114 = vmatpush1.bf16.msra.mxu0 %v4117_v11 }
 0x194   :  { %3136 = vmatprep.subr.bf16.mxu1 %v3714_v63  ;;  %3140 = vmatprep.subr.bf16.mxu0 %v3890_v49 }
 0x197   :  { %3138 = vmatpush3.bf16.msra.mxu1 %v4132_v18 }
 0x198   :  { %3171 = vmatprep.subr.bf16.mxu1 %v3714_v63 }
 0x229   :  { %v355_v20 = vpop.f32.mrb[0].mxu0 }
 0x22a   :  { %v357_v21 = vpop.f32.mrb[1].mxu0  ;;  %v4187_v42 = vadd.f32 %v355_v20, %v270_v34 }
 0x22b   :  { %v4194_v54 = vadd.f32 %v357_v21, %v274_v40 }
 0x22d   :  { %v361_v22 = vpop.f32.mrb[2].mxu0  ;;  %v2652_v24 = vpop.f32.mrb[4].mxu1 }
 0x22e   :  { %v363_v25 = vpop.f32.mrb[3].mxu0  ;;  %v432_v27 = vpop.f32.mrb[5].mxu1  ;;  %v4191_v50 = vadd.f32 %v361_v22, %v270_v34  ;;  %v277_v22 = vsub.s32 2, %v3806_v9 }
 0x22f   :  { %v4197_v0 = vadd.f32 %v363_v25, %v274_v40 }
 0x230   :  { %v4202_v25 = vrot.slane %v489_v32, %v277_v22 }
 0x249   :  { %v572_v41 = vpop.f32.mrb[4].mxu0 }
 0x24a   :  { %v573_v43 = vadd.f32 %v572_v41, %v4183_v36  ;;  %v574_v45 = vpop.f32.mrb[5].mxu0  ;;  %v278_v41 = vrot.slane %v265_v31, %v277_v22 }
 0x24b   :  { %v575_v48 = vadd.f32 %v574_v45, %v4185_v39 }
 0x24c   :  { %v648_v51 = vrot.slane %v573_v43, 1  ;;  %v651_v52 = vadd.f32 %v573_v43, %v4187_v42  ;;  %v4207_v9 = vadd.f32 %v2652_v24, %v278_v41 }
 0x24d   :  { %v666_v56 = vrot.slane %v575_v48, 1  ;;  %v643_v59 = vpop.f32.mrb[6].mxu1  ;;  %v669_v2 = vadd.f32 %v575_v48, %v4194_v54 }
 0x24e   :  { %v652_v60 = vadd.f32 %v648_v51, %v4191_v50  ;;  %v2404_v61 = vmul.f32 -1.442695, %v651_v52  ;;  %v2687_v62 = vpop.f32.mrb[7].mxu1  ;;  %v644_v34 = vadd.f32 %v643_v59, %v4202_v25  ;;  %v4205_v52 = vadd.f32 %v432_v27, %v278_v41 }
 0x24f   :  { %v670_v8 = vadd.f32 %v666_v56, %v4197_v0  ;;  %v2406_v10 = vmul.f32 -1.442695, %v669_v2 }
 0x250   :  { %3524 = vpow2.f32 %v2404_v61  ;;  %v2405_v6 = vmul.f32 -1.442695, %v652_v60  ;;  %v684_v48 = vrot.slane %v644_v34, 1 }
 0x251   :  { %v2407_v14 = vmul.f32 -1.442695, %v670_v8 }
 0x252   :  { %3526 = vpow2.f32 %v2405_v6 }
 0x253   :  { %3528 = vpow2.f32 %v2406_v10 }
 0x254   :  { %3530 = vpow2.f32 %v2407_v14 }
 0x25a   :  { %v3525_v16 = vpop.eup %3524 }
 0x25b   :  { %v659_v20 = vadd.f32 1.0, %v3525_v16 }
 0x25c   :  { %v3527_v21 = vpop.eup %3526 }
 0x25d   :  { %v660_v30 = vadd.f32 1.0, %v3527_v21  ;;  %3532 = vrcp.f32 %v659_v20  ;;  %v3529_v33 = vpop.eup %3528 }
 0x25e   :  { %v3531_v40 = vpop.eup %3530  ;;  %v677_v43 = vadd.f32 1.0, %v3529_v33 }
 0x25f   :  { %3534 = vrcp.f32 %v660_v30  ;;  %v678_v45 = vadd.f32 1.0, %v3531_v40 }
 0x260   :  { %3536 = vrcp.f32 %v677_v43 }
 0x261   :  { %3538 = vrcp.f32 %v678_v45 }
 0x267   :  { %v3533_v51 = vpop.eup %3532 }
 0x268   :  { %v687_v56 = vmul.f32 %v3533_v51, %v644_v34 }
 0x269   :  { %v3535_v60 = vpop.eup %3534 }
 0x26a   :  { %v688_v32 = vmul.f32 %v3535_v60, %v684_v48  ;;  %v689_v61 = vadd.f32 %v687_v56, %v4205_v52  ;;  %v3537_v31 = vpop.eup %3536 }
 0x26b   :  { %v3539_v59 = vpop.eup %3538  ;;  %v693_v2 = vsub.f32 1.0, %v3537_v31  ;;  %v697_v10 = vmul.f32 0.0, %v3537_v31 }
 0x26c   :  { %v690_v62 = vadd.f32 %v688_v32, %v4207_v9  ;;  %3540 = vtanh.f32 %v689_v61  ;;  %v694_v8 = vsub.f32 1.0, %v3539_v59  ;;  %v698_v20 = vmul.f32 0.0, %v3539_v59 }
 0x26e   :  { %3542 = vtanh.f32 %v690_v62 }
 0x276   :  { %v3541_v6 = vpop.eup %3540 }
 0x277   :  { %v695_v27 = vmul.f32 %v3541_v6, %v693_v2 }
 0x278   :  { %v3543_v14 = vpop.eup %3542 }
 0x279   :  { %v696_v16 = vmul.f32 %v3543_v14, %v694_v8  ;;  %v4211_v24 = vadd.f32 %v697_v10, %v695_v27 }
 0x27b   :  { %v4213_v21 = vadd.f32 %v698_v20, %v696_v16 }
 0x27d   :  { %v703_v22 = vrot.slane %v4213_v21, 7 }
 0x27f   :  { %v705_v30 = vsel %vm704_vm5, %v703_v22, %v4211_v24 }
 0x280   :  { %772 = vmatmul.mubr.f32.vlgmr.msra.gmra.mrb[6].mxu0 %v705_v30  ;;  %2721 = vmatmul.mubr.f32.vlgmr.msra.gmra.mrb[8].mxu1 %v705_v30 }
 0x281   :  { %3142 = vmatpush1.bf16.msra.mxu0 %v3916_v4  ;;  %3173 = vmatpush3.bf16.msra.mxu1 %v3952_v17 }
 0x282   :  { %3144 = vmatprep.subr.bf16.mxu0 %v3921_v7  ;;  %3174 = vmatprep.subr.bf16.mxu1 %v3714_v63 }
 0x283   :  { %974 = vmatprep.mubr.f32.mxu0 %v3712_v53  ;;  %2755 = vmatprep.mubr.msk.f32.mxu1 %vm3715_vm4, %v3712_v53 }
 0x285   :  { %3146 = vmatpush1.bf16.msra.mxu0 %v3947_v15  ;;  %3176 = vmatpush3.bf16.msra.mxu1 %v3986_v28 }
 0x286   :  { %3148 = vmatprep.subr.bf16.mxu0 %v3955_v19  ;;  %3177 = vmatprep.subr.bf16.mxu1 %v3714_v63 }
 0x289   :  { %3150 = vmatpush1.bf16.msra.mxu0 %v3980_v26  ;;  %3179 = vmatpush3.bf16.msra.mxu1 %v4017_v37 }
 0x28a   :  { %3152 = vmatprep.subr.bf16.mxu0 %v3989_v29  ;;  %3180 = vmatprep.subr.bf16.mxu1 %v3714_v63 }
 0x28d   :  { %3154 = vmatpush1.bf16.msra.mxu0 %v4011_v35  ;;  %3182 = vmatpush3.bf16.msra.mxu1 %v4045_v46 }
 0x28e   :  { %3156 = vmatprep.subr.bf16.mxu0 %v4020_v38  ;;  %3183 = vmatprep.subr.bf16.mxu1 %v3714_v63 }
 0x291   :  { %3158 = vmatpush1.bf16.msra.mxu0 %v4039_v44  ;;  %3185 = vmatpush3.bf16.msra.mxu1 %v4073_v57 }
 0x292   :  { %3160 = vmatprep.subr.bf16.mxu0 %v4048_v47  ;;  %3186 = vmatprep.subr.bf16.mxu1 %v3714_v63 }
 0x295   :  { %3162 = vmatpush1.bf16.msra.mxu0 %v4067_v55  ;;  %3188 = vmatpush3.bf16.msra.mxu1 %v4101_v3 }
 0x296   :  { %3164 = vmatprep.subr.bf16.mxu0 %v4076_v58  ;;  %3189 = vmatprep.subr.bf16.mxu1 %v3714_v63 }
 0x299   :  { %3166 = vmatpush1.bf16.msra.mxu0 %v4095_v1  ;;  %3191 = vmatpush3.bf16.msra.mxu1 %v4120_v13 }
 0x29a   :  { %3168 = vmatprep.subr.bf16.mxu0 %v4104_v5  ;;  %3192 = vmatprep.subr.bf16.mxu1 %v3714_v63 }
 0x29d   :  { %3170 = vmatpush1.bf16.msra.mxu0 %v4117_v11  ;;  %3194 = vmatpush3.bf16.msra.mxu1 %v4132_v18 }
 0x29e   :  { %3196 = vmatprep.subr.bf16.mxu0 %v3890_v49  ;;  %3227 = vmatprep.subr.bf16.mxu1 %v3714_v63 }
 0x353   :  { %v773_v33 = vpop.f32.mrb[6].mxu0  ;;  %v844_v34 = vpop.f32.mrb[8].mxu1 }
 0x354   :  { %v774_v40 = vadd.f32 %v773_v33, %v4183_v36  ;;  %v775_v41 = vpop.f32.mrb[7].mxu0  ;;  %v2722_v43 = vpop.f32.mrb[9].mxu1  ;;  %v845_v20 = vadd.f32 %v844_v34, %v4202_v25  ;;  %v898_v34 = vrot.slane %v4211_v24, 7 }
 0x355   :  { %v776_v45 = vadd.f32 %v775_v41, %v4185_v39 }
 0x356   :  { %v849_v48 = vrot.slane %v774_v40, 7  ;;  %v853_v51 = vadd.f32 %v774_v40, %v4191_v50  ;;  %v885_v41 = vrot.slane %v845_v20, 7 }
 0x357   :  { %v867_v56 = vrot.slane %v776_v45, 7  ;;  %v871_v61 = vadd.f32 %v776_v45, %v4197_v0 }
 0x358   :  { %v852_v60 = vadd.f32 %v849_v48, %v4187_v42  ;;  %v2409_v32 = vmul.f32 -1.442695, %v853_v51 }
 0x359   :  { %v870_v31 = vadd.f32 %v867_v56, %v4194_v54  ;;  %v2411_v59 = vmul.f32 -1.442695, %v871_v61 }
 0x35a   :  { %v2408_v62 = vmul.f32 -1.442695, %v852_v60  ;;  %3544 = vpow2.f32 %v2409_v32 }
 0x35b   :  { %v2410_v2 = vmul.f32 -1.442695, %v870_v31 }
 0x35c   :  { %3546 = vpow2.f32 %v2408_v62 }
 0x35d   :  { %3548 = vpow2.f32 %v2411_v59 }
 0x35e   :  { %3550 = vpow2.f32 %v2410_v2 }
 0x364   :  { %v3545_v6 = vpop.eup %3544 }
 0x365   :  { %v861_v8 = vadd.f32 1.0, %v3545_v6 }
 0x366   :  { %v3547_v27 = vpop.eup %3546 }
 0x367   :  { %v860_v10 = vadd.f32 1.0, %v3547_v27  ;;  %3552 = vrcp.f32 %v861_v8  ;;  %v3549_v14 = vpop.eup %3548 }
 0x368   :  { %v3551_v16 = vpop.eup %3550  ;;  %v879_v30 = vadd.f32 1.0, %v3549_v14 }
 0x369   :  { %3554 = vrcp.f32 %v860_v10  ;;  %v878_v33 = vadd.f32 1.0, %v3551_v16 }
 0x36a   :  { %3556 = vrcp.f32 %v879_v30 }
 0x36b   :  { %3558 = vrcp.f32 %v878_v33 }
 0x371   :  { %v3553_v40 = vpop.eup %3552 }
 0x372   :  { %v889_v43 = vmul.f32 %v3553_v40, %v845_v20 }
 0x373   :  { %v3555_v45 = vpop.eup %3554 }
 0x374   :  { %v888_v48 = vmul.f32 %v3555_v45, %v885_v41  ;;  %v891_v51 = vadd.f32 %v889_v43, %v4207_v9  ;;  %v3557_v60 = vpop.eup %3556 }
 0x375   :  { %v3559_v32 = vpop.eup %3558  ;;  %v895_v61 = vsub.f32 1.0, %v3557_v60  ;;  %v902_v2 = vmul.f32 %v3557_v60, %v703_v22 }
 0x376   :  { %v890_v56 = vadd.f32 %v888_v48, %v4205_v52  ;;  %3560 = vtanh.f32 %v891_v51  ;;  %v894_v31 = vsub.f32 1.0, %v3559_v32  ;;  %v901_v27 = vmul.f32 %v3559_v32, %v898_v34 }
 0x378   :  { %3562 = vtanh.f32 %v890_v56 }
 0x380   :  { %v3561_v62 = vpop.eup %3560 }
 0x381   :  { %v897_v59 = vmul.f32 %v3561_v62, %v895_v61 }
 0x382   :  { %v3563_v6 = vpop.eup %3562 }
 0x383   :  { %v896_v8 = vmul.f32 %v3563_v6, %v894_v31  ;;  %v4267_v10 = vadd.f32 %v902_v2, %v897_v59 }
 0x385   :  { %v4269_v14 = vadd.f32 %v901_v27, %v896_v8 }
 0x387   :  { %v907_v16 = vrot.slane %v4269_v14, 1 }
 0x389   :  { %v908_v20 = vsel %vm704_vm5, %v4267_v10, %v907_v16 }
 0x38a   :  { %975 = vmatmul.mubr.f32.vlgmr.msra.gmra.mrb[8].mxu0 %v908_v20  ;;  %2756 = vmatmul.mubr.f32.vlgmr.msra.gmra.mrb[10].mxu1 %v908_v20 }
 0x38b   :  { %3198 = vmatpush1.bf16.msra.mxu0 %v3916_v4  ;;  %3229 = vmatpush3.bf16.msra.mxu1 %v3952_v17 }
 0x38c   :  { %3200 = vmatprep.subr.bf16.mxu0 %v3921_v7  ;;  %3230 = vmatprep.subr.bf16.mxu1 %v3714_v63 }
 0x38d   :  { %1182 = vmatprep.mubr.f32.mxu0 %v3712_v53  ;;  %2790 = vmatprep.mubr.msk.f32.mxu1 %vm3715_vm4, %v3712_v53 }
 0x38f   :  { %3202 = vmatpush1.bf16.msra.mxu0 %v3947_v15  ;;  %3232 = vmatpush3.bf16.msra.mxu1 %v3986_v28 }
 0x390   :  { %3204 = vmatprep.subr.bf16.mxu0 %v3955_v19  ;;  %3233 = vmatprep.subr.bf16.mxu1 %v3714_v63 }
 0x393   :  { %3206 = vmatpush1.bf16.msra.mxu0 %v3980_v26  ;;  %3235 = vmatpush3.bf16.msra.mxu1 %v4017_v37 }
 0x394   :  { %3208 = vmatprep.subr.bf16.mxu0 %v3989_v29  ;;  %3236 = vmatprep.subr.bf16.mxu1 %v3714_v63 }
 0x397   :  { %3210 = vmatpush1.bf16.msra.mxu0 %v4011_v35  ;;  %3238 = vmatpush3.bf16.msra.mxu1 %v4045_v46 }
 0x398   :  { %3212 = vmatprep.subr.bf16.mxu0 %v4020_v38  ;;  %3239 = vmatprep.subr.bf16.mxu1 %v3714_v63 }
 0x39b   :  { %3214 = vmatpush1.bf16.msra.mxu0 %v4039_v44  ;;  %3241 = vmatpush3.bf16.msra.mxu1 %v4073_v57 }
 0x39c   :  { %3216 = vmatprep.subr.bf16.mxu0 %v4048_v47  ;;  %3242 = vmatprep.subr.bf16.mxu1 %v3714_v63 }
 0x39f   :  { %3218 = vmatpush1.bf16.msra.mxu0 %v4067_v55  ;;  %3244 = vmatpush3.bf16.msra.mxu1 %v4101_v3 }
 0x3a0   :  { %3220 = vmatprep.subr.bf16.mxu0 %v4076_v58  ;;  %3245 = vmatprep.subr.bf16.mxu1 %v3714_v63 }
 0x3a3   :  { %3222 = vmatpush1.bf16.msra.mxu0 %v4095_v1  ;;  %3247 = vmatpush3.bf16.msra.mxu1 %v4120_v13 }
 0x3a4   :  { %3224 = vmatprep.subr.bf16.mxu0 %v4104_v5  ;;  %3248 = vmatprep.subr.bf16.mxu1 %v3714_v63 }
 0x3a7   :  { %3226 = vmatpush1.bf16.msra.mxu0 %v4117_v11  ;;  %3250 = vmatpush3.bf16.msra.mxu1 %v4132_v18 }
 0x3a8   :  { %3252 = vmatprep.subr.bf16.mxu0 %v3890_v49  ;;  %3283 = vmatprep.subr.bf16.mxu1 %v3714_v63 }
 0x45d   :  { %v976_v22 = vpop.f32.mrb[8].mxu0  ;;  %v1047_v30 = vpop.f32.mrb[10].mxu1 }
 0x45e   :  { %v977_v33 = vadd.f32 %v976_v22, %v4183_v36  ;;  %v978_v40 = vpop.f32.mrb[9].mxu0  ;;  %v2757_v41 = vpop.f32.mrb[11].mxu1 }
 0x45f   :  { %v979_v43 = vadd.f32 %v978_v40, %v4185_v39  ;;  %v1048_v41 = vadd.f32 %v1047_v30, %v4202_v25 }
 0x460   :  { %v1052_v45 = vrot.slane %v977_v33, 6  ;;  %v1053_v48 = vrot.slane %v977_v33, 7 }
 0x461   :  { %v1071_v51 = vrot.slane %v979_v43, 6  ;;  %v1072_v56 = vrot.slane %v979_v43, 7  ;;  %v1090_v43 = vrot.slane %v1048_v41, 6 }
 0x462   :  { %v1056_v60 = vadd.f32 %v1052_v45, %v4187_v42  ;;  %v1057_v32 = vadd.f32 %v1053_v48, %v4191_v50  ;;  %v1091_v48 = vrot.slane %v1048_v41, 7  ;;  %v2153_v41 = vsel %vm2152_vm6, %v4211_v24, %v4269_v14 }
 0x463   :  { %v1075_v61 = vadd.f32 %v1071_v51, %v4194_v54  ;;  %v1076_v62 = vadd.f32 %v1072_v56, %v4197_v0 }
 0x464   :  { %v2412_v34 = vmul.f32 -1.442695, %v1056_v60  ;;  %v2413_v31 = vmul.f32 -1.442695, %v1057_v32  ;;  %v1104_v60 = vrot.slane %v4269_v14, 7 }
 0x465   :  { %v2414_v59 = vmul.f32 -1.442695, %v1075_v61  ;;  %v2415_v2 = vmul.f32 -1.442695, %v1076_v62  ;;  %v1105_v61 = vrot.slane %v4267_v10, 7 }
 0x466   :  { %3564 = vpow2.f32 %v2412_v34 }
 0x467   :  { %3566 = vpow2.f32 %v2413_v31 }
 0x468   :  { %3568 = vpow2.f32 %v2414_v59 }
 0x469   :  { %3570 = vpow2.f32 %v2415_v2 }
 0x470   :  { %v3565_v6 = vpop.eup %3564 }
 0x471   :  { %v3567_v8 = vpop.eup %3566  ;;  %v1064_v27 = vadd.f32 1.0, %v3565_v6 }
 0x472   :  { %v3569_v16 = vpop.eup %3568  ;;  %v1065_v20 = vadd.f32 1.0, %v3567_v8 }
 0x473   :  { %v3571_v22 = vpop.eup %3570  ;;  %3572 = vrcp.f32 %v1064_v27  ;;  %v1083_v33 = vadd.f32 1.0, %v3569_v16 }
 0x474   :  { %3574 = vrcp.f32 %v1065_v20  ;;  %v1084_v40 = vadd.f32 1.0, %v3571_v22 }
 0x475   :  { %3576 = vrcp.f32 %v1083_v33 }
 0x476   :  { %3578 = vrcp.f32 %v1084_v40 }
 0x47d   :  { %v3573_v45 = vpop.eup %3572 }
 0x47e   :  { %v3575_v51 = vpop.eup %3574  ;;  %v1094_v56 = vmul.f32 %v3573_v45, %v1090_v43  ;;  %v2154_v43 = vsel %vm2152_vm6, %v4213_v21, %v4267_v10 }
 0x47f   :  { %v3577_v32 = vpop.eup %3576  ;;  %v1095_v62 = vmul.f32 %v3575_v51, %v1091_v48 }
 0x480   :  { %v3579_v34 = vpop.eup %3578  ;;  %v1096_v31 = vadd.f32 %v1094_v56, %v4205_v52  ;;  %v1108_v59 = vmul.f32 %v3577_v32, %v1104_v60  ;;  %v1100_v30 = vsub.f32 1.0, %v3577_v32 }
 0x481   :  { %v1097_v2 = vadd.f32 %v1095_v62, %v4207_v9  ;;  %v1109_v6 = vmul.f32 %v3579_v34, %v1105_v61  ;;  %v1101_v27 = vsub.f32 1.0, %v3579_v34 }
 0x482   :  { %3580 = vtanh.f32 %v1096_v31 }
 0x483   :  { %3582 = vtanh.f32 %v1097_v2 }
 0x48c   :  { %v3581_v8 = vpop.eup %3580 }
 0x48d   :  { %v3583_v16 = vpop.eup %3582  ;;  %v1102_v20 = vmul.f32 %v3581_v8, %v1100_v30 }
 0x48e   :  { %v1103_v22 = vmul.f32 %v3583_v16, %v1101_v27 }
 0x48f   :  { %v4320_v33 = vadd.f32 %v1108_v59, %v1102_v20 }
 0x490   :  { %v4322_v40 = vadd.f32 %v1109_v6, %v1103_v22 }
 0x491   :  { %v1114_v45 = vrot.slane %v4320_v33, 2  ;;  %v4330_v48 = vsel %vm2155_vm7, %v2153_v41, %v4320_v33 }
 0x492   :  { %v1115_v51 = vrot.slane %v4322_v40, 1  ;;  %v4334_v56 = vsel %vm2155_vm7, %v2154_v43, %v4322_v40 }
 0x494   :  { %v1116_v60 = vsel %vm704_vm5, %v1115_v51, %v1114_v45 }
 0x495   :  { %1183 = vmatmul.mubr.f32.vlgmr.msra.gmra.mrb[10].mxu0 %v1116_v60  ;;  %2791 = vmatmul.mubr.f32.vlgmr.msra.gmra.mrb[12].mxu1 %v1116_v60 }
 0x496   :  { %3254 = vmatpush1.bf16.msra.mxu0 %v3916_v4  ;;  %3285 = vmatpush3.bf16.msra.mxu1 %v3952_v17 }
 0x497   :  { %3256 = vmatprep.subr.bf16.mxu0 %v3921_v7  ;;  %3286 = vmatprep.subr.bf16.mxu1 %v3714_v63 }
 0x498   :  { %1390 = vmatprep.mubr.f32.mxu0 %v3712_v53  ;;  %2825 = vmatprep.mubr.msk.f32.mxu1 %vm3715_vm4, %v3712_v53 }
 0x49a   :  { %3258 = vmatpush1.bf16.msra.mxu0 %v3947_v15  ;;  %3288 = vmatpush3.bf16.msra.mxu1 %v3986_v28 }
 0x49b   :  { %3260 = vmatprep.subr.bf16.mxu0 %v3955_v19  ;;  %3289 = vmatprep.subr.bf16.mxu1 %v3714_v63 }
 0x49e   :  { %3262 = vmatpush1.bf16.msra.mxu0 %v3980_v26  ;;  %3291 = vmatpush3.bf16.msra.mxu1 %v4017_v37 }
 0x49f   :  { %3264 = vmatprep.subr.bf16.mxu0 %v3989_v29  ;;  %3292 = vmatprep.subr.bf16.mxu1 %v3714_v63 }
 0x4a2   :  { %3266 = vmatpush1.bf16.msra.mxu0 %v4011_v35  ;;  %3294 = vmatpush3.bf16.msra.mxu1 %v4045_v46 }
 0x4a3   :  { %3268 = vmatprep.subr.bf16.mxu0 %v4020_v38  ;;  %3295 = vmatprep.subr.bf16.mxu1 %v3714_v63 }
 0x4a6   :  { %3270 = vmatpush1.bf16.msra.mxu0 %v4039_v44  ;;  %3297 = vmatpush3.bf16.msra.mxu1 %v4073_v57 }
 0x4a7   :  { %3272 = vmatprep.subr.bf16.mxu0 %v4048_v47  ;;  %3298 = vmatprep.subr.bf16.mxu1 %v3714_v63 }
 0x4aa   :  { %3274 = vmatpush1.bf16.msra.mxu0 %v4067_v55  ;;  %3300 = vmatpush3.bf16.msra.mxu1 %v4101_v3 }
 0x4ab   :  { %3276 = vmatprep.subr.bf16.mxu0 %v4076_v58  ;;  %3301 = vmatprep.subr.bf16.mxu1 %v3714_v63 }
 0x4ae   :  { %3278 = vmatpush1.bf16.msra.mxu0 %v4095_v1  ;;  %3303 = vmatpush3.bf16.msra.mxu1 %v4120_v13 }
 0x4af   :  { %3280 = vmatprep.subr.bf16.mxu0 %v4104_v5  ;;  %3304 = vmatprep.subr.bf16.mxu1 %v3714_v63 }
 0x4b2   :  { %3282 = vmatpush1.bf16.msra.mxu0 %v4117_v11  ;;  %3306 = vmatpush3.bf16.msra.mxu1 %v4132_v18 }
 0x4b3   :  { %3308 = vmatprep.subr.bf16.mxu0 %v3890_v49  ;;  %3339 = vmatprep.subr.bf16.mxu1 %v3714_v63 }
 0x568   :  { %v1184_v24 = vpop.f32.mrb[10].mxu0  ;;  %v1255_v21 = vpop.f32.mrb[12].mxu1 }
 0x569   :  { %v1185_v10 = vadd.f32 %v1184_v24, %v4183_v36  ;;  %v1186_v14 = vpop.f32.mrb[11].mxu0  ;;  %v2792_v32 = vpop.f32.mrb[13].mxu1 }
 0x56a   :  { %v1187_v61 = vadd.f32 %v1186_v14, %v4185_v39  ;;  %v1256_v32 = vadd.f32 %v1255_v21, %v4202_v25 }
 0x56b   :  { %v1260_v62 = vrot.slane %v1185_v10, 5  ;;  %v1261_v34 = vrot.slane %v1185_v10, 6 }
 0x56c   :  { %v1279_v31 = vrot.slane %v1187_v61, 5  ;;  %v1280_v59 = vrot.slane %v1187_v61, 6  ;;  %v1298_v61 = vrot.slane %v1256_v32, 5 }
 0x56d   :  { %v1264_v2 = vadd.f32 %v1260_v62, %v4187_v42  ;;  %v1265_v6 = vadd.f32 %v1261_v34, %v4191_v50  ;;  %v1299_v34 = vrot.slane %v1256_v32, 6 }
 0x56e   :  { %v1283_v30 = vadd.f32 %v1279_v31, %v4194_v54  ;;  %v1284_v8 = vadd.f32 %v1280_v59, %v4197_v0 }
 0x56f   :  { %v2416_v27 = vmul.f32 -1.442695, %v1264_v2  ;;  %v2417_v16 = vmul.f32 -1.442695, %v1265_v6  ;;  %v1312_v2 = vrot.slane %v4320_v33, 7 }
 0x570   :  { %v2418_v20 = vmul.f32 -1.442695, %v1283_v30  ;;  %v2419_v22 = vmul.f32 -1.442695, %v1284_v8  ;;  %v1313_v8 = vrot.slane %v4322_v40, 7 }
 0x571   :  { %3584 = vpow2.f32 %v2416_v27 }
 0x572   :  { %3586 = vpow2.f32 %v2417_v16 }
 0x573   :  { %3588 = vpow2.f32 %v2418_v20 }
 0x574   :  { %3590 = vpow2.f32 %v2419_v22 }
 0x57b   :  { %v3585_v41 = vpop.eup %3584 }
 0x57c   :  { %v3587_v43 = vpop.eup %3586  ;;  %v1272_v45 = vadd.f32 1.0, %v3585_v41 }
 0x57d   :  { %v3589_v51 = vpop.eup %3588  ;;  %v1273_v60 = vadd.f32 1.0, %v3587_v43 }
 0x57e   :  { %v3591_v24 = vpop.eup %3590  ;;  %3592 = vrcp.f32 %v1272_v45  ;;  %v1291_v10 = vadd.f32 1.0, %v3589_v51 }
 0x57f   :  { %3594 = vrcp.f32 %v1273_v60  ;;  %v1292_v14 = vadd.f32 1.0, %v3591_v24 }
 0x580   :  { %3596 = vrcp.f32 %v1291_v10 }
 0x581   :  { %3598 = vrcp.f32 %v1292_v14 }
 0x588   :  { %v3593_v62 = vpop.eup %3592 }
 0x589   :  { %v3595_v31 = vpop.eup %3594  ;;  %v1302_v59 = vmul.f32 %v3593_v62, %v1298_v61 }
 0x58a   :  { %v3597_v6 = vpop.eup %3596  ;;  %v1303_v30 = vmul.f32 %v3595_v31, %v1299_v34 }
 0x58b   :  { %v3599_v27 = vpop.eup %3598  ;;  %v1304_v16 = vadd.f32 %v1302_v59, %v4205_v52  ;;  %v1316_v20 = vmul.f32 %v3597_v6, %v1312_v2  ;;  %v1308_v21 = vsub.f32 1.0, %v3597_v6 }
 0x58c   :  { %v1305_v22 = vadd.f32 %v1303_v30, %v4207_v9  ;;  %v1317_v41 = vmul.f32 %v3599_v27, %v1313_v8  ;;  %v1309_v45 = vsub.f32 1.0, %v3599_v27 }
 0x58d   :  { %3600 = vtanh.f32 %v1304_v16 }
 0x58e   :  { %3602 = vtanh.f32 %v1305_v22 }
 0x597   :  { %v3601_v43 = vpop.eup %3600 }
 0x598   :  { %v3603_v51 = vpop.eup %3602  ;;  %v1310_v60 = vmul.f32 %v3601_v43, %v1308_v21 }
 0x599   :  { %v1311_v24 = vmul.f32 %v3603_v51, %v1309_v45 }
 0x59a   :  { %v4383_v33 = vadd.f32 %v1316_v20, %v1310_v60 }
 0x59b   :  { %v4385_v10 = vadd.f32 %v1317_v41, %v1311_v24 }
 0x59c   :  { %v1322_v40 = vrot.slane %v4383_v33, 3  ;;  %v4390_v14 = vsel %vm2158_vm8, %v4330_v48, %v4383_v33 }
 0x59d   :  { %v1323_v32 = vrot.slane %v4385_v10, 2  ;;  %v4395_v61 = vsel %vm2158_vm8, %v4334_v56, %v4385_v10 }
 0x59f   :  { %v1324_v62 = vsel %vm704_vm5, %v1323_v32, %v1322_v40 }
 0x5a0   :  { %1391 = vmatmul.mubr.f32.vlgmr.msra.gmra.mrb[12].mxu0 %v1324_v62  ;;  %2826 = vmatmul.mubr.f32.vlgmr.msra.gmra.mrb[14].mxu1 %v1324_v62 }
 0x5a1   :  { %3310 = vmatpush1.bf16.msra.mxu0 %v3916_v4  ;;  %3341 = vmatpush3.bf16.msra.mxu1 %v3952_v17 }
 0x5a2   :  { %3312 = vmatprep.subr.bf16.mxu0 %v3921_v7  ;;  %3342 = vmatprep.subr.bf16.mxu1 %v3714_v63 }
 0x5a3   :  { %1598 = vmatprep.mubr.f32.mxu0 %v3712_v53  ;;  %2860 = vmatprep.mubr.msk.f32.mxu1 %vm3715_vm4, %v3712_v53 }
 0x5a5   :  { %3314 = vmatpush1.bf16.msra.mxu0 %v3947_v15  ;;  %3344 = vmatpush3.bf16.msra.mxu1 %v3986_v28 }
 0x5a6   :  { %3316 = vmatprep.subr.bf16.mxu0 %v3955_v19  ;;  %3345 = vmatprep.subr.bf16.mxu1 %v3714_v63 }
 0x5a9   :  { %3318 = vmatpush1.bf16.msra.mxu0 %v3980_v26  ;;  %3347 = vmatpush3.bf16.msra.mxu1 %v4017_v37 }
 0x5aa   :  { %3320 = vmatprep.subr.bf16.mxu0 %v3989_v29  ;;  %3348 = vmatprep.subr.bf16.mxu1 %v3714_v63 }
 0x5ad   :  { %3322 = vmatpush1.bf16.msra.mxu0 %v4011_v35  ;;  %3350 = vmatpush3.bf16.msra.mxu1 %v4045_v46 }
 0x5ae   :  { %3324 = vmatprep.subr.bf16.mxu0 %v4020_v38  ;;  %3351 = vmatprep.subr.bf16.mxu1 %v3714_v63 }
 0x5b1   :  { %3326 = vmatpush1.bf16.msra.mxu0 %v4039_v44  ;;  %3353 = vmatpush3.bf16.msra.mxu1 %v4073_v57 }
 0x5b2   :  { %3328 = vmatprep.subr.bf16.mxu0 %v4048_v47  ;;  %3354 = vmatprep.subr.bf16.mxu1 %v3714_v63 }
 0x5b5   :  { %3330 = vmatpush1.bf16.msra.mxu0 %v4067_v55  ;;  %3356 = vmatpush3.bf16.msra.mxu1 %v4101_v3 }
 0x5b6   :  { %3332 = vmatprep.subr.bf16.mxu0 %v4076_v58  ;;  %3357 = vmatprep.subr.bf16.mxu1 %v3714_v63 }
 0x5b9   :  { %3334 = vmatpush1.bf16.msra.mxu0 %v4095_v1  ;;  %3359 = vmatpush3.bf16.msra.mxu1 %v4120_v13 }
 0x5ba   :  { %3336 = vmatprep.subr.bf16.mxu0 %v4104_v5  ;;  %3360 = vmatprep.subr.bf16.mxu1 %v3714_v63 }
 0x5bd   :  { %3338 = vmatpush1.bf16.msra.mxu0 %v4117_v11  ;;  %3362 = vmatpush3.bf16.msra.mxu1 %v4132_v18 }
 0x5be   :  { %3364 = vmatprep.subr.bf16.mxu0 %v3890_v49  ;;  %3395 = vmatprep.subr.bf16.mxu1 %v3714_v63 }
 0x673   :  { %v1392_v48 = vpop.f32.mrb[12].mxu0  ;;  %v1463_v56 = vpop.f32.mrb[14].mxu1 }
 0x674   :  { %v1393_v34 = vadd.f32 %v1392_v48, %v4183_v36  ;;  %v1394_v31 = vpop.f32.mrb[13].mxu0  ;;  %v2827_v59 = vpop.f32.mrb[15].mxu1 }
 0x675   :  { %v1395_v2 = vadd.f32 %v1394_v31, %v4185_v39  ;;  %v1464_v59 = vadd.f32 %v1463_v56, %v4202_v25 }
 0x676   :  { %v1468_v6 = vrot.slane %v1393_v34, 4  ;;  %v1469_v30 = vrot.slane %v1393_v34, 5 }
 0x677   :  { %v1487_v8 = vrot.slane %v1395_v2, 4  ;;  %v1488_v27 = vrot.slane %v1395_v2, 5  ;;  %v1506_v2 = vrot.slane %v1464_v59, 4 }
 0x678   :  { %v1472_v16 = vadd.f32 %v1468_v6, %v4187_v42  ;;  %v1473_v20 = vadd.f32 %v1469_v30, %v4191_v50  ;;  %v1507_v30 = vrot.slane %v1464_v59, 5 }
 0x679   :  { %v1491_v22 = vadd.f32 %v1487_v8, %v4194_v54  ;;  %v1492_v41 = vadd.f32 %v1488_v27, %v4197_v0 }
 0x67a   :  { %v2420_v21 = vmul.f32 -1.442695, %v1472_v16  ;;  %v2421_v43 = vmul.f32 -1.442695, %v1473_v20  ;;  %v1520_v16 = vrot.slane %v4383_v33, 7 }
 0x67b   :  { %v2422_v45 = vmul.f32 -1.442695, %v1491_v22  ;;  %v2423_v51 = vmul.f32 -1.442695, %v1492_v41  ;;  %v1521_v41 = vrot.slane %v4385_v10, 7 }
 0x67c   :  { %3604 = vpow2.f32 %v2420_v21 }
 0x67d   :  { %3606 = vpow2.f32 %v2421_v43 }
 0x67e   :  { %3608 = vpow2.f32 %v2422_v45 }
 0x67f   :  { %3610 = vpow2.f32 %v2423_v51 }
 0x686   :  { %v3605_v60 = vpop.eup %3604 }
 0x687   :  { %v3607_v24 = vpop.eup %3606  ;;  %v1480_v40 = vadd.f32 1.0, %v3605_v60 }
 0x688   :  { %v3609_v32 = vpop.eup %3608  ;;  %v1481_v62 = vadd.f32 1.0, %v3607_v24 }
 0x689   :  { %v3611_v48 = vpop.eup %3610  ;;  %3612 = vrcp.f32 %v1480_v40  ;;  %v1499_v34 = vadd.f32 1.0, %v3609_v32 }
 0x68a   :  { %3614 = vrcp.f32 %v1481_v62  ;;  %v1500_v31 = vadd.f32 1.0, %v3611_v48 }
 0x68b   :  { %3616 = vrcp.f32 %v1499_v34 }
 0x68c   :  { %3618 = vrcp.f32 %v1500_v31 }
 0x693   :  { %v3613_v6 = vpop.eup %3612 }
 0x694   :  { %v3615_v8 = vpop.eup %3614  ;;  %v1510_v27 = vmul.f32 %v3613_v6, %v1506_v2 }
 0x695   :  { %v3617_v20 = vpop.eup %3616  ;;  %v1511_v22 = vmul.f32 %v3615_v8, %v1507_v30 }
 0x696   :  { %v3619_v21 = vpop.eup %3618  ;;  %v1512_v43 = vadd.f32 %v1510_v27, %v4205_v52  ;;  %v1524_v45 = vmul.f32 %v3617_v20, %v1520_v16  ;;  %v1516_v56 = vsub.f32 1.0, %v3617_v20 }
 0x697   :  { %v1513_v51 = vadd.f32 %v1511_v22, %v4207_v9  ;;  %v1525_v60 = vmul.f32 %v3619_v21, %v1521_v41  ;;  %v1517_v40 = vsub.f32 1.0, %v3619_v21 }
 0x698   :  { %3620 = vtanh.f32 %v1512_v43 }
 0x699   :  { %3622 = vtanh.f32 %v1513_v51 }
 0x6a2   :  { %v3621_v24 = vpop.eup %3620 }
 0x6a3   :  { %v3623_v32 = vpop.eup %3622  ;;  %v1518_v62 = vmul.f32 %v3621_v24, %v1516_v56 }
 0x6a4   :  { %v1519_v48 = vmul.f32 %v3623_v32, %v1517_v40 }
 0x6a5   :  { %v4444_v33 = vadd.f32 %v1524_v45, %v1518_v62 }
 0x6a6   :  { %v4446_v34 = vadd.f32 %v1525_v60, %v1519_v48 }
 0x6a7   :  { %v1530_v10 = vrot.slane %v4444_v33, 4  ;;  %v4451_v31 = vsel %vm2161_vm9, %v4390_v14, %v4444_v33 }
 0x6a8   :  { %v1531_v59 = vrot.slane %v4446_v34, 3  ;;  %v4456_v2 = vsel %vm2161_vm9, %v4395_v61, %v4446_v34 }
 0x6aa   :  { %v1532_v6 = vsel %vm704_vm5, %v1531_v59, %v1530_v10 }
 0x6ab   :  { %1599 = vmatmul.mubr.f32.vlgmr.msra.gmra.mrb[14].mxu0 %v1532_v6  ;;  %2861 = vmatmul.mubr.f32.vlgmr.msra.gmra.mrb[16].mxu1 %v1532_v6 }
 0x6ac   :  { %3366 = vmatpush1.bf16.msra.mxu0 %v3916_v4  ;;  %3397 = vmatpush3.bf16.msra.mxu1 %v3952_v17 }
 0x6ad   :  { %3368 = vmatprep.subr.bf16.mxu0 %v3921_v7  ;;  %3398 = vmatprep.subr.bf16.mxu1 %v3714_v63 }
 0x6ae   :  { %1806 = vmatprep.mubr.f32.mxu0 %v3712_v53  ;;  %2895 = vmatprep.mubr.msk.f32.mxu1 %vm3715_vm4, %v3712_v53 }
 0x6b0   :  { %3370 = vmatpush1.bf16.msra.mxu0 %v3947_v15  ;;  %3400 = vmatpush3.bf16.msra.mxu1 %v3986_v28 }
 0x6b1   :  { %3372 = vmatprep.subr.bf16.mxu0 %v3955_v19  ;;  %3401 = vmatprep.subr.bf16.mxu1 %v3714_v63 }
 0x6b4   :  { %3374 = vmatpush1.bf16.msra.mxu0 %v3980_v26  ;;  %3403 = vmatpush3.bf16.msra.mxu1 %v4017_v37 }
 0x6b5   :  { %3376 = vmatprep.subr.bf16.mxu0 %v3989_v29  ;;  %3404 = vmatprep.subr.bf16.mxu1 %v3714_v63 }
 0x6b8   :  { %3378 = vmatpush1.bf16.msra.mxu0 %v4011_v35  ;;  %3406 = vmatpush3.bf16.msra.mxu1 %v4045_v46 }
 0x6b9   :  { %3380 = vmatprep.subr.bf16.mxu0 %v4020_v38  ;;  %3407 = vmatprep.subr.bf16.mxu1 %v3714_v63 }
 0x6bc   :  { %3382 = vmatpush1.bf16.msra.mxu0 %v4039_v44  ;;  %3409 = vmatpush3.bf16.msra.mxu1 %v4073_v57 }
 0x6bd   :  { %3384 = vmatprep.subr.bf16.mxu0 %v4048_v47  ;;  %3410 = vmatprep.subr.bf16.mxu1 %v3714_v63 }
 0x6c0   :  { %3386 = vmatpush1.bf16.msra.mxu0 %v4067_v55  ;;  %3412 = vmatpush3.bf16.msra.mxu1 %v4101_v3 }
 0x6c1   :  { %3388 = vmatprep.subr.bf16.mxu0 %v4076_v58  ;;  %3413 = vmatprep.subr.bf16.mxu1 %v3714_v63 }
 0x6c4   :  { %3390 = vmatpush1.bf16.msra.mxu0 %v4095_v1  ;;  %3415 = vmatpush3.bf16.msra.mxu1 %v4120_v13 }
 0x6c5   :  { %3392 = vmatprep.subr.bf16.mxu0 %v4104_v5  ;;  %3416 = vmatprep.subr.bf16.mxu1 %v3714_v63 }
 0x6c8   :  { %3394 = vmatpush1.bf16.msra.mxu0 %v4117_v11  ;;  %3418 = vmatpush3.bf16.msra.mxu1 %v4132_v18 }
 0x6c9   :  { %3420 = vmatprep.subr.bf16.mxu0 %v3890_v49  ;;  %3451 = vmatprep.subr.bf16.mxu1 %v3714_v63 }
 0x77e   :  { %v1600_v14 = vpop.f32.mrb[14].mxu0  ;;  %v1671_v61 = vpop.f32.mrb[16].mxu1 }
 0x77f   :  { %v1601_v30 = vadd.f32 %v1600_v14, %v4183_v36  ;;  %v1602_v8 = vpop.f32.mrb[15].mxu0  ;;  %v2862_v27 = vpop.f32.mrb[17].mxu1 }
 0x780   :  { %v1603_v16 = vadd.f32 %v1602_v8, %v4185_v39  ;;  %v1672_v8 = vadd.f32 %v1671_v61, %v4202_v25 }
 0x781   :  { %v1676_v20 = vrot.slane %v1601_v30, 3  ;;  %v1677_v22 = vrot.slane %v1601_v30, 4 }
 0x782   :  { %v1695_v41 = vrot.slane %v1603_v16, 3  ;;  %v1696_v21 = vrot.slane %v1603_v16, 4  ;;  %v1714_v27 = vrot.slane %v1672_v8, 3 }
 0x783   :  { %v1680_v43 = vadd.f32 %v1676_v20, %v4187_v42  ;;  %v1681_v45 = vadd.f32 %v1677_v22, %v4191_v50  ;;  %v1715_v20 = vrot.slane %v1672_v8, 4 }
 0x784   :  { %v1699_v49 = vadd.f32 %v1695_v41, %v4194_v54  ;;  %v1700_v51 = vadd.f32 %v1696_v21, %v4197_v0  ;;  %v1728_v21 = vrot.slane %v4444_v33, 7 }
 0x785   :  { %v2424_v60 = vmul.f32 -1.442695, %v1680_v43  ;;  %v2425_v56 = vmul.f32 -1.442695, %v1681_v45 }
 0x786   :  { %v2426_v24 = vmul.f32 -1.442695, %v1699_v49  ;;  %v2427_v40 = vmul.f32 -1.442695, %v1700_v51  ;;  %v1729_v49 = vrot.slane %v4446_v34, 7 }
 0x787   :  { %3624 = vpow2.f32 %v2424_v60 }
 0x788   :  { %3626 = vpow2.f32 %v2425_v56 }
 0x789   :  { %3628 = vpow2.f32 %v2426_v24 }
 0x78a   :  { %3630 = vpow2.f32 %v2427_v40 }
 0x791   :  { %v3625_v32 = vpop.eup %3624 }
 0x792   :  { %v3627_v62 = vpop.eup %3626  ;;  %v1688_v48 = vadd.f32 1.0, %v3625_v32 }
 0x793   :  { %v3629_v10 = vpop.eup %3628  ;;  %v1689_v59 = vadd.f32 1.0, %v3627_v62 }
 0x794   :  { %v3631_v6 = vpop.eup %3630  ;;  %3632 = vrcp.f32 %v1688_v48  ;;  %v1707_v14 = vadd.f32 1.0, %v3629_v10 }
 0x795   :  { %3634 = vrcp.f32 %v1689_v59  ;;  %v1708_v30 = vadd.f32 1.0, %v3631_v6 }
 0x796   :  { %3636 = vrcp.f32 %v1707_v14 }
 0x797   :  { %3638 = vrcp.f32 %v1708_v30 }
 0x79e   :  { %v3633_v16 = vpop.eup %3632 }
 0x79f   :  { %v3635_v22 = vpop.eup %3634  ;;  %v1718_v41 = vmul.f32 %v3633_v16, %v1714_v27 }
 0x7a0   :  { %v3637_v43 = vpop.eup %3636  ;;  %v1719_v45 = vmul.f32 %v3635_v22, %v1715_v20 }
 0x7a1   :  { %v3639_v51 = vpop.eup %3638  ;;  %v1720_v60 = vadd.f32 %v1718_v41, %v4205_v52  ;;  %v1732_v56 = vmul.f32 %v3637_v43, %v1728_v21  ;;  %v1724_v61 = vsub.f32 1.0, %v3637_v43 }
 0x7a2   :  { %v1721_v24 = vadd.f32 %v1719_v45, %v4207_v9  ;;  %v1733_v40 = vmul.f32 %v3639_v51, %v1729_v49  ;;  %v1725_v62 = vsub.f32 1.0, %v3639_v51 }
 0x7a3   :  { %3640 = vtanh.f32 %v1720_v60 }
 0x7a4   :  { %3642 = vtanh.f32 %v1721_v24 }
 0x7ad   :  { %v3641_v32 = vpop.eup %3640 }
 0x7ae   :  { %v3643_v48 = vpop.eup %3642  ;;  %v1726_v10 = vmul.f32 %v3641_v32, %v1724_v61 }
 0x7af   :  { %v1727_v59 = vmul.f32 %v3643_v48, %v1725_v62 }
 0x7b0   :  { %v4505_v33 = vadd.f32 %v1732_v56, %v1726_v10 }
 0x7b1   :  { %v4507_v6 = vadd.f32 %v1733_v40, %v1727_v59 }
 0x7b2   :  { %v1738_v34 = vrot.slane %v4505_v33, 5  ;;  %v4512_v14 = vsel %vm2164_vm10, %v4451_v31, %v4505_v33  ;;  %v1936_v49 = vrot.slane %v4505_v33, 7 }
 0x7b3   :  { %v1739_v30 = vrot.slane %v4507_v6, 4  ;;  %v4517_v8 = vsel %vm2164_vm10, %v4456_v2, %v4507_v6  ;;  %v1937_v56 = vrot.slane %v4507_v6, 7 }
 0x7b5   :  { %v1740_v27 = vsel %vm704_vm5, %v1739_v30, %v1738_v34 }
 0x7b6   :  { %1807 = vmatmul.mubr.f32.vlgmr.msra.gmra.mrb[16].mxu0 %v1740_v27  ;;  %2896 = vmatmul.mubr.f32.vlgmr.msra.gmra.mrb[18].mxu1 %v1740_v27 }
 0x7b7   :  { %3422 = vmatpush1.bf16.msra.mxu0 %v3916_v4  ;;  %3453 = vmatpush3.bf16.msra.mxu1 %v3952_v17 }
 0x7b8   :  { %3424 = vmatprep.subr.bf16.mxu0 %v3921_v7  ;;  %3454 = vmatprep.subr.bf16.mxu1 %v3714_v63 }
 0x7b9   :  { %2014 = vmatprep.mubr.f32.mxu0 %v3712_v53  ;;  %2930 = vmatprep.mubr.msk.f32.mxu1 %vm3715_vm4, %v3712_v53 }
 0x7bb   :  { %3426 = vmatpush1.bf16.msra.mxu0 %v3947_v15  ;;  %3456 = vmatpush3.bf16.msra.mxu1 %v3986_v28 }
 0x7bc   :  { %3428 = vmatprep.subr.bf16.mxu0 %v3955_v19  ;;  %3457 = vmatprep.subr.bf16.mxu1 %v3714_v63 }
 0x7bf   :  { %3430 = vmatpush1.bf16.msra.mxu0 %v3980_v26  ;;  %3459 = vmatpush3.bf16.msra.mxu1 %v4017_v37 }
 0x7c0   :  { %3432 = vmatprep.subr.bf16.mxu0 %v3989_v29  ;;  %3460 = vmatprep.subr.bf16.mxu1 %v3714_v63 }
 0x7c3   :  { %3434 = vmatpush1.bf16.msra.mxu0 %v4011_v35  ;;  %3462 = vmatpush3.bf16.msra.mxu1 %v4045_v46 }
 0x7c4   :  { %3436 = vmatprep.subr.bf16.mxu0 %v4020_v38  ;;  %3463 = vmatprep.subr.bf16.mxu1 %v3714_v63 }
 0x7c7   :  { %3438 = vmatpush1.bf16.msra.mxu0 %v4039_v44  ;;  %3465 = vmatpush3.bf16.msra.mxu1 %v4073_v57 }
 0x7c8   :  { %3440 = vmatprep.subr.bf16.mxu0 %v4048_v47  ;;  %3466 = vmatprep.subr.bf16.mxu1 %v3714_v63 }
 0x7cb   :  { %3442 = vmatpush1.bf16.msra.mxu0 %v4067_v55  ;;  %3468 = vmatpush3.bf16.msra.mxu1 %v4101_v3 }
 0x7cc   :  { %3444 = vmatprep.subr.bf16.mxu0 %v4076_v58  ;;  %3469 = vmatprep.subr.bf16.mxu1 %v3714_v63 }
 0x7cf   :  { %3446 = vmatpush1.bf16.msra.mxu0 %v4095_v1  ;;  %3471 = vmatpush3.bf16.msra.mxu1 %v4120_v13 }
 0x7d0   :  { %3448 = vmatprep.subr.bf16.mxu0 %v4104_v5  ;;  %3472 = vmatprep.subr.bf16.mxu1 %v3714_v63 }
 0x7d3   :  { %3450 = vmatpush1.bf16.msra.mxu0 %v4117_v11  ;;  %3474 = vmatpush3.bf16.msra.mxu1 %v4132_v18 }
 0x7d4   :  { %3507 = vmatprep.subr.bf16.mxu1 %v3714_v63 }
 0x889   :  { %v1808_v4 = vpop.f32.mrb[16].mxu0  ;;  %v1879_v7 = vpop.f32.mrb[18].mxu1 }
 0x88a   :  { %v1809_v15 = vadd.f32 %v1808_v4, %v4183_v36  ;;  %v1810_v17 = vpop.f32.mrb[17].mxu0  ;;  %v2897_v19 = vpop.f32.mrb[19].mxu1  ;;  %v1880_v20 = vadd.f32 %v1879_v7, %v4202_v25 }
 0x88b   :  { %v1811_v26 = vadd.f32 %v1810_v17, %v4185_v39 }
 0x88c   :  { %v1884_v28 = vrot.slane %v1809_v15, 2  ;;  %v1885_v29 = vrot.slane %v1809_v15, 3  ;;  %v1922_v22 = vrot.slane %v1880_v20, 2  ;;  %v1923_v21 = vrot.slane %v1880_v20, 3 }
 0x88d   :  { %v1903_v35 = vrot.slane %v1811_v26, 2  ;;  %v1904_v37 = vrot.slane %v1811_v26, 3  ;;  %v2173_v26 = vld [vmem:[%s4703_s9] sm:$0xff] }
 0x88e   :  { %v1888_v38 = vadd.f32 %v1884_v28, %v4187_v42  ;;  %v1889_v44 = vadd.f32 %v1885_v29, %v4191_v50  ;;  %v2176_v29 = vld [vmem:[%s4703_s9 + $0x18] sm:$0xff] }
 0x88f   :  { %v1907_v46 = vadd.f32 %v1903_v35, %v4194_v54  ;;  %v1908_v47 = vadd.f32 %v1904_v37, %v4197_v0  ;;  %v2177_v35 = vld [vmem:[%s4703_s9 + $0x20] sm:$0xff]  ;;  %v2178_v37 = vld [vmem:[%s4703_s9 + $0x28] sm:$0xff] }
 0x890   :  { %v2428_v55 = vmul.f32 -1.442695, %v1888_v38  ;;  %v2429_v57 = vmul.f32 -1.442695, %v1889_v44  ;;  %v3483_v38 = vpack.c.bf16 %v2178_v37, %v2177_v35  ;;  %v2179_v44 = vld [vmem:[%s4703_s9 + $0x30] sm:$0xff] }
 0x891   :  { %v2430_v58 = vmul.f32 -1.442695, %v1907_v46  ;;  %v2431_v1 = vmul.f32 -1.442695, %v1908_v47  ;;  %v2180_v46 = vld [vmem:[%s4703_s9 + $0x38] sm:$0xff] }
 0x892   :  { %3644 = vpow2.f32 %v2428_v55  ;;  %v3487_v47 = vpack.c.bf16 %v2180_v46, %v2179_v44  ;;  %v2181_v55 = vld [vmem:[%s4703_s9 + $0x40] sm:$0xff] }
 0x893   :  { %3646 = vpow2.f32 %v2429_v57  ;;  %v2182_v57 = vld [vmem:[%s4703_s9 + $0x48] sm:$0xff] }
 0x894   :  { %3648 = vpow2.f32 %v2430_v58  ;;  %v3491_v58 = vpack.c.bf16 %v2182_v57, %v2181_v55 }
 0x895   :  { %3650 = vpow2.f32 %v2431_v1  ;;  %v2183_v1 = vld [vmem:[%s4703_s9 + $0x50] sm:$0xff] }
 0x89c   :  { %v3645_v3 = vpop.eup %3644 }
 0x89d   :  { %v3647_v5 = vpop.eup %3646  ;;  %v1896_v11 = vadd.f32 1.0, %v3645_v3  ;;  %v2184_v3 = vld [vmem:[%s4703_s9 + $0x58] sm:$0xff] }
 0x89e   :  { %v3649_v13 = vpop.eup %3648  ;;  %v1897_v18 = vadd.f32 1.0, %v3647_v5  ;;  %v3495_v5 = vpack.c.bf16 %v2184_v3, %v2183_v1 }
 0x89f   :  { %v3651_v31 = vpop.eup %3650  ;;  %3652 = vrcp.f32 %v1896_v11  ;;  %v1915_v2 = vadd.f32 1.0, %v3649_v13  ;;  %v2185_v11 = vld [vmem:[%s4703_s9 + $0x60] sm:$0xff]  ;;  %v2186_v13 = vld [vmem:[%s4703_s9 + $0x68] sm:$0xff] }
 0x8a0   :  { %3654 = vrcp.f32 %v1897_v18  ;;  %v1916_v16 = vadd.f32 1.0, %v3651_v31  ;;  %v3499_v18 = vpack.c.bf16 %v2186_v13, %v2185_v11  ;;  %v2187_v31 = vld [vmem:[%s4703_s9 + $0x70] sm:$0xff] }
 0x8a1   :  { %3656 = vrcp.f32 %v1915_v2  ;;  %v2188_v2 = vld [vmem:[%s4703_s9 + $0x78] sm:$0xff]  ;;  %v2291_v13 = vld [vmem:[%s4705_s11 + $0x10] sm:$0xff] }
 0x8a2   :  { %3658 = vrcp.f32 %v1916_v16  ;;  %v3503_v16 = vpack.c.bf16 %v2188_v2, %v2187_v31  ;;  %v2294_v31 = vld [vmem:[%s4705_s11 + $0x28] sm:$0xff] }
 0x8a9   :  { %v3653_v41 = vpop.eup %3652 }
 0x8aa   :  { %v3655_v43 = vpop.eup %3654  ;;  %v1926_v45 = vmul.f32 %v3653_v41, %v1922_v22 }
 0x8ab   :  { %v3657_v51 = vpop.eup %3656  ;;  %v1927_v60 = vmul.f32 %v3655_v43, %v1923_v21 }
 0x8ac   :  { %v3659_v24 = vpop.eup %3658  ;;  %v1928_v40 = vadd.f32 %v1926_v45, %v4205_v52  ;;  %v1940_v61 = vmul.f32 %v3657_v51, %v1936_v49  ;;  %v1932_v48 = vsub.f32 1.0, %v3657_v51 }
 0x8ad   :  { %v1929_v32 = vadd.f32 %v1927_v60, %v4207_v9  ;;  %v1941_v62 = vmul.f32 %v3659_v24, %v1937_v56  ;;  %v1933_v59 = vsub.f32 1.0, %v3659_v24 }
 0x8ae   :  { %3660 = vtanh.f32 %v1928_v40 }
 0x8af   :  { %3662 = vtanh.f32 %v1929_v32 }
 0x8b8   :  { %v3661_v10 = vpop.eup %3660 }
 0x8b9   :  { %v3663_v34 = vpop.eup %3662  ;;  %v1934_v30 = vmul.f32 %v3661_v10, %v1932_v48 }
 0x8ba   :  { %v1935_v27 = vmul.f32 %v3663_v34, %v1933_v59 }
 0x8bb   :  { %v4565_v33 = vadd.f32 %v1940_v61, %v1934_v30 }
 0x8bc   :  { %v4567_v4 = vadd.f32 %v1941_v62, %v1935_v27 }
 0x8bd   :  { %v1946_v6 = vrot.slane %v4565_v33, 6  ;;  %v4572_v7 = vsel %vm2167_vm11, %v4512_v14, %v4565_v33  ;;  %v2174_v14 = vld [vmem:[%s4703_s9 + $0x8] sm:$0xff] }
 0x8be   :  { %v1947_v15 = vrot.slane %v4567_v4, 5  ;;  %v4577_v17 = vsel %vm2167_vm11, %v4517_v8, %v4567_v4  ;;  %v3475_v28 = vpack.c.bf16 %v2174_v14, %v2173_v26  ;;  %v2175_v8 = vld [vmem:[%s4703_s9 + $0x10] sm:$0xff] }
 0x8c0   :  { %v1948_v19 = vsel %vm704_vm5, %v1947_v15, %v1946_v6  ;;  %3476 = vmatprep.subr.bf16.mxu0 %v3475_v28 }
 0x8c1   :  { %2015 = vmatmul.mubr.f32.vlgmr.msra.gmra.mrb[18].mxu0 %v1948_v19  ;;  %2931 = vmatmul.mubr.f32.vlgmr.msra.gmra.mrb[20].mxu1 %v1948_v19 }
 0x8c2   :  { %2984 = vmatprep.mubr.msk.f32.mxu1 %vm3715_vm4, %v3712_v53  ;;  %3478 = vmatpush3.bf16.msra.mxu0 %v3475_v28  ;;  %v3479_v53 = vpack.c.bf16 %v2176_v29, %v2175_v8  ;;  %v2144_v28 = vrot.slane %v4565_v33, 7 }
 0x8c4   :  { %3480 = vmatprep.subr.bf16.mxu0 %v3479_v53 }
 0x8c6   :  { %3482 = vmatpush3.bf16.msra.mxu0 %v3479_v53  ;;  %v2145_v53 = vrot.slane %v4567_v4, 7 }
 0x8c7   :  { %3484 = vmatprep.subr.bf16.mxu0 %v3483_v38 }
 0x8ca   :  { %3486 = vmatpush3.bf16.msra.mxu0 %v3483_v38 }
 0x8cb   :  { %3488 = vmatprep.subr.bf16.mxu0 %v3487_v47 }
 0x8ce   :  { %3490 = vmatpush3.bf16.msra.mxu0 %v3487_v47 }
 0x8cf   :  { %3492 = vmatprep.subr.bf16.mxu0 %v3491_v58 }
 0x8d2   :  { %3494 = vmatpush3.bf16.msra.mxu0 %v3491_v58 }
 0x8d3   :  { %3496 = vmatprep.subr.bf16.mxu0 %v3495_v5 }
 0x8d6   :  { %3498 = vmatpush3.bf16.msra.mxu0 %v3495_v5  ;;  %v2290_v5 = vld [vmem:[%s4705_s11 + $0x8] sm:$0xff] }
 0x8d7   :  { %3500 = vmatprep.subr.bf16.mxu0 %v3499_v18 }
 0x8da   :  { %3502 = vmatpush3.bf16.msra.mxu0 %v3499_v18  ;;  %v2293_v18 = vld [vmem:[%s4705_s11 + $0x20] sm:$0xff] }
 0x8db   :  { %3504 = vmatprep.subr.bf16.mxu0 %v3503_v16  ;;  %v3514_v2 = vpack.c.bf16 %v2294_v31, %v2293_v18 }
 0x8de   :  { %3506 = vmatpush3.bf16.msra.mxu0 %v3503_v16  ;;  %v2295_v16 = vld [vmem:[%s4705_s11 + $0x30] sm:$0xff] }
 0x994   :  { %v2016_v20 = vpop.f32.mrb[18].mxu0  ;;  %v2087_v22 = vpop.f32.mrb[20].mxu1 }
 0x995   :  { %v2017_v41 = vadd.f32 %v2016_v20, %v4183_v36  ;;  %v2018_v21 = vpop.f32.mrb[19].mxu0  ;;  %v2932_v43 = vpop.f32.mrb[21].mxu1  ;;  %v2296_v20 = vld [vmem:[%s4705_s11 + $0x38] sm:$0xff] }
 0x996   :  { %v2019_v45 = vadd.f32 %v2018_v21, %v4185_v39 }
 0x997   :  { %v2092_v49 = vrot.slane %v2017_v41, 1  ;;  %v2093_v51 = vrot.slane %v2017_v41, 2  ;;  %v2436_v41 = vld [vmem:[%s4704_s10] ss:$0 sm:$0xff] }
 0x998   :  { %v2111_v60 = vrot.slane %v2019_v45, 1  ;;  %v2112_v56 = vrot.slane %v2019_v45, 2 }
 0x999   :  { %v2096_v24 = vadd.f32 %v2092_v49, %v4187_v42  ;;  %v2097_v40 = vadd.f32 %v2093_v51, %v4191_v50 }
 0x99a   :  { %v2115_v61 = vadd.f32 %v2111_v60, %v4194_v54  ;;  %v2116_v32 = vadd.f32 %v2112_v56, %v4197_v0  ;;  %v2088_v0 = vadd.f32 %v2087_v22, %v4202_v25  ;;  %v3517_v22 = vpack.c.bf16 %v2296_v20, %v2295_v16 }
 0x99b   :  { %v2432_v62 = vmul.f32 -1.442695, %v2096_v24  ;;  %v2433_v48 = vmul.f32 -1.442695, %v2097_v40 }
 0x99c   :  { %v2434_v10 = vmul.f32 -1.442695, %v2115_v61  ;;  %v2435_v36 = vmul.f32 -1.442695, %v2116_v32  ;;  %v2130_v6 = vrot.slane %v2088_v0, 1  ;;  %v2131_v19 = vrot.slane %v2088_v0, 2 }
 0x99d   :  { %3664 = vpow2.f32 %v2432_v62 }
 0x99e   :  { %3666 = vpow2.f32 %v2433_v48 }
 0x99f   :  { %3668 = vpow2.f32 %v2434_v10 }
 0x9a0   :  { %3670 = vpow2.f32 %v2435_v36 }
 0x9a7   :  { %v3665_v39 = vpop.eup %3664 }
 0x9a8   :  { %v3667_v59 = vpop.eup %3666  ;;  %v2104_v34 = vadd.f32 1.0, %v3665_v39 }
 0x9a9   :  { %v3669_v30 = vpop.eup %3668  ;;  %v2105_v27 = vadd.f32 1.0, %v3667_v59 }
 0x9aa   :  { %v3671_v42 = vpop.eup %3670  ;;  %3672 = vrcp.f32 %v2104_v34  ;;  %v2123_v50 = vadd.f32 1.0, %v3669_v30 }
 0x9ab   :  { %3674 = vrcp.f32 %v2105_v27  ;;  %v2124_v54 = vadd.f32 1.0, %v3671_v42 }
 0x9ac   :  { %3676 = vrcp.f32 %v2123_v50 }
 0x9ad   :  { %3678 = vrcp.f32 %v2124_v54 }
 0x9b4   :  { %v3673_v15 = vpop.eup %3672 }
 0x9b5   :  { %v3675_v26 = vpop.eup %3674  ;;  %v2134_v14 = vmul.f32 %v3673_v15, %v2130_v6 }
 0x9b6   :  { %v3677_v8 = vpop.eup %3676  ;;  %v2135_v29 = vmul.f32 %v3675_v26, %v2131_v19 }
 0x9b7   :  { %v3679_v35 = vpop.eup %3678  ;;  %v2136_v37 = vadd.f32 %v2134_v14, %v4205_v52  ;;  %v2148_v38 = vmul.f32 %v3677_v8, %v2144_v28  ;;  %v2140_v25 = vsub.f32 1.0, %v3677_v8 }
 0x9b8   :  { %v2137_v44 = vadd.f32 %v2135_v29, %v4207_v9  ;;  %v2149_v46 = vmul.f32 %v3679_v35, %v2145_v53  ;;  %v2141_v55 = vsub.f32 1.0, %v3679_v35  ;;  %v2289_v9 = vld [vmem:[%s4705_s11] sm:$0xff] }
 0x9b9   :  { %3680 = vtanh.f32 %v2136_v37  ;;  %v3508_v11 = vpack.c.bf16 %v2290_v5, %v2289_v9 }
 0x9ba   :  { %3682 = vtanh.f32 %v2137_v44 }
 0x9bb   :  { %3509 = vmatpush3.bf16.msra.mxu1 %v3508_v11 }
 0x9bc   :  { %3510 = vmatprep.subr.bf16.mxu1 %v3714_v63 }
 0x9c3   :  { %v3681_v47 = vpop.eup %3680 }
 0x9c4   :  { %v3683_v57 = vpop.eup %3682  ;;  %v2142_v58 = vmul.f32 %v3681_v47, %v2140_v25 }
 0x9c5   :  { %v2143_v33 = vmul.f32 %v3683_v57, %v2141_v55 }
 0x9c6   :  { %v2150_v1 = vadd.f32 %v2148_v38, %v2142_v58 }
 0x9c7   :  { %v2151_v3 = vadd.f32 %v2149_v46, %v2143_v33 }
 0x9c8   :  { %v2171_v4 = vsel %vm2170_vm12, %v4572_v7, %v2150_v1  ;;  %v2292_v7 = vld [vmem:[%s4705_s11 + $0x18] sm:$0xff] }
 0x9c9   :  { %2965 = vmatprep.mubr.f32.mxu0 %v2171_v4  ;;  %v2172_v52 = vsel %vm2170_vm12, %v4577_v17, %v2151_v3  ;;  %v3511_v17 = vpack.c.bf16 %v2292_v7, %v2291_v13 }
 0x9ca   :  { %2966 = vmatmul.mubr.f32.vlgmr.msra.gmra.mrb[20].mxu0 %v2172_v52 }
 0x9cb   :  { %3512 = vmatpush3.bf16.msra.mxu1 %v3511_v17 }
 0x9cc   :  { %3513 = vmatprep.subr.bf16.mxu1 %v3714_v63 }
 0x9cf   :  { %3515 = vmatpush3.bf16.msra.mxu1 %v3514_v2 }
 0x9d0   :  { %3516 = vmatprep.subr.bf16.mxu1 %v3714_v63 }
 0x9d3   :  { %3518 = vmatpush3.bf16.msra.mxu1 %v3517_v22 }
 0xa9d   :  { %v2967_v21 = vpop.f32.mrb[20].mxu0 }
 0xa9e   :  { %v2268_v43 = vadd.f32 %v2967_v21, %v2436_v41  ;;  %v2262_v45 = vpop.f32.mrb[21].mxu0 }
 0xa9f   :  { %v2263_v49 = vadd.f32 %v2436_v41, %v2262_v45 }
 0xaa0   :  { %3684 = vtanh.f32 %v2268_v43 }
 0xaa1   :  { %3686 = vtanh.f32 %v2263_v49 }
 0xaaa   :  { %v3685_v51 = vpop.eup %3684 }
 0xaab   :  { %v3687_v60 = vpop.eup %3686  ;;  %v2274_v56 = vmul.f32 %v3685_v51, %v3967_v23 }
 0xaac   :  { %v2273_v24 = vmul.f32 %v3687_v60, %v3933_v12  ;;  %v2437_v12 = vld [vmem:[%s4706_s12] ss:$0 sm:$0xff] }
 0xaad   :  { %v2282_v40 = vsel %vm282_vm3, %v2274_v56, 0.0 }
 0xaae   :  { %v2283_v63 = vrot.slane %v2282_v40, 4  ;;  %v2275_v61 = vsel %vm282_vm3, %v2273_v24, 0.0 }
 0xaaf   :  { %v2276_v32 = vrot.slane %v2275_v61, 4 }
 0xab0   :  { %v2284_v62 = vadd.f32 %v2283_v63, %v2282_v40 }
 0xab1   :  { %v2277_v48 = vadd.f32 %v2276_v32, %v2275_v61 }
 0xab2   :  { %v2285_v10 = vrot.slane %v2284_v62, 2 }
 0xab3   :  { %v2278_v36 = vrot.slane %v2277_v48, 2 }
 0xab4   :  { %v2286_v39 = vadd.f32 %v2285_v10, %v2284_v62 }
 0xab5   :  { %v2279_v59 = vadd.f32 %v2278_v36, %v2277_v48 }
 0xab6   :  { %v2287_v34 = vrot.slane %v2286_v39, 1 }
 0xab7   :  { %v2280_v30 = vrot.slane %v2279_v59, 1 }
 0xab8   :  { %v2288_v27 = vadd.f32 %v2287_v34, %v2286_v39 }
 0xab9   :  { %v2281_v42 = vadd.f32 %v2280_v30, %v2279_v59 }
 0xabb   :  { %v2306_v23 = vsel %vm704_vm5, %v2288_v27, %v2281_v42 }
 0xabc   :  { %2985 = vmatmul.mubr.msk.f32.vlgmr.msra.gmra.mrb[22].mxu1 %vm282_vm3, %v2306_v23 }
 0xb8f   :  { %v2375_v50 = vpop.f32.mrb[22].mxu1 }
 0xb90   :  { %v2376_v54 = vadd.f32 %v2437_v12, %v2375_v50  ;;  %v2986_v0 = vpop.f32.mrb[23].mxu1 }
 0xb92   :  { %2380 = vst.msk [vmem:[#allocation2] sm:$0x3] %vm2379_vm13, %v2376_v54 }
 0xb93   :  { %3699 = shalt.err (!%p3696_p4)
}
 0xb94   :  { %s3700_s4 = scalar_lea.hbm %s4707_s13, 32 }
 0xb95   :  { %p3701_p5 = scmp.ne.s32.totalorder %s4707_s13, %s3700_s4  ;;  %p3704_p6 = scmp.lt.u32.totalorder %s3700_s4, %s4707_s13 }
 0xb97   :  { %p3706_p7 = pnand %p3704_p6, %p3701_p5 }
 0xb99   :  { %3709 = shalt.err (!%p3706_p7)
}
 0xb9a   :  { %2390 = dma.vmem_to_hbm [thread:$0]  %s2388_s16, 32, %s4707_s13, [#allocation3]  }
 0xb9b   :  { %3710 = dma.done.wait [#allocation3], 32  }
 0xb9c   :  { %3711 = vsyncadd [#allocation3], 4294967264 }
 0xb9d   :  { %2394 = vsyncpa [#allocation3], 1 }

</bundles_post_ra>
